<compile_context>
chip_gen: v5e
topology: v5e:2x2
jax: 0.10.0
libtpu: 0.0.40
codegen_flags: <defaults>
</compile_context>

<pallas_src>
import math
import functools

import jax
import jax.numpy as jnp
from jax.experimental import pallas as pl
from jax.experimental.pallas import tpu as pltpu


# -----------------------------------------------------------------------------
# Index tables from the reference forward (PM2.5 / AQI-36, K = 36 nodes)
# -----------------------------------------------------------------------------

IDX1 = list(range(2, 22))                                   # rows taken from x1
IDX2 = [0, 1, 22, 23, 24, 26, 27, 28, 29, 31]               # rows taken from x2
IDX3 = [25, 30, 32, 33, 34, 35]                             # rows taken from x3
PERM = [20, 21, 0, 1, 2, 3, 4, 5, 6, 7, 8, 9, 10, 11, 12, 13, 14, 15, 16, 17,
        18, 19, 22, 23, 24, 30, 25, 26, 27, 28, 31, 29, 32, 33, 34, 35]


def _build_flat_perm(K):
    """Collapse gather+concat+final permute into one flat index over (3*K)."""
    concat_src = ([(0, k) for k in IDX1] +
                  [(1, k) for k in IDX2] +
                  [(2, k) for k in IDX3])
    return [concat_src[p][0] * K + concat_src[p][1] for p in PERM]


# -----------------------------------------------------------------------------
# Fused Pallas kernel: both batches merged on the lane axis, single grid step
# -----------------------------------------------------------------------------

def _fused_forward_kernel(x_ref, side_ref, condw_ref, mcw_ref, headw_ref,
                          bias_ref, o_ref, *, channels, layers):
    C = channels
    C2 = 2 * C
    n_layers = 4 * layers
    inv_sqrt2 = 1.0 / math.sqrt(2.0)
    skip_scale = 1.0 / math.sqrt(layers)

    # packed f32 constant slab: [in_w | in_b | out_b | op1_b | op2_b]
    biases = bias_ref[...]                                   # (211, 1) f32
    in_w = biases[0:C]
    in_b = biases[C:2 * C]
    off = 2 * C
    out_b_all = biases[off:off + n_layers * C2]
    off += n_layers * C2
    op1_b = biases[off:off + 3 * C]
    off += 3 * C
    op2_b = biases[off:off + 3]

    # input_projection (Cin=1) as a VPU broadcast multiply-add + ReLU.
    x0 = x_ref[...]                                          # (1, Nt) f32
    h = jnp.maximum(in_w * x0 + in_b, 0.0)                   # (C, Nt) f32

    # side/cond projection for ALL layers + folded (mid_w @ dp + mid_b + cond_b)
    # per-batch bias (selected by the indicator rows of side_aug): one M=128 matmul.
    z_all = jnp.dot(condw_ref[...], side_ref[...],
                    preferred_element_type=jnp.float32)      # (n_layers*2C, Nt) f32

    w_all = mcw_ref[...]                                     # (2*n_layers*2C, C) bf16
    mid_w_all = w_all[:n_layers * C2]
    out_w_all = w_all[n_layers * C2:]

    def run_layer(h_cur, li):
        # TODO(synk): forward_time / forward_feature (Temporal/SpatialLearning)
        # are identity pass-throughs (source not provided with the reference).
        r0 = li * C2
        z = jnp.dot(mid_w_all[r0:r0 + C2], h_cur.astype(jnp.bfloat16),
                    preferred_element_type=jnp.float32) + z_all[r0:r0 + C2]   # (2C, Nt)
        gate, filt = z[:C], z[C:]
        sig = pl.reciprocal(1.0 + jnp.exp(-gate), approx=True)   # sigmoid: EUP exp + approx recip
        g = sig * jnp.tanh(filt)                                  # (C, Nt)
        o = jnp.dot(out_w_all[r0:r0 + C2], g.astype(jnp.bfloat16),
                    preferred_element_type=jnp.float32) + out_b_all[r0:r0 + C2]
        return (h_cur + o[:C]) * inv_sqrt2, o[C:]                 # residual, skip

    # TODO(synk): if layers > 1 is ever used, switch these Python unrolls to
    # lax.fori_loop(..., unroll=True) to bound vreg live ranges.
    li = 0

    # group 0 (residual_layers): x is REPLACED by the scaled skip sum.
    h_cur = h
    ssum = jnp.zeros_like(h)
    for _ in range(layers):
        h_cur, skip = run_layer(h_cur, li)
        ssum = ssum + skip
        li += 1
    h_cur = ssum * skip_scale

    # groups 1..3 (residual_layers1..3): x keeps flowing, skip sums feed heads.
    group_s = []
    for _gi in range(3):
        ssum = jnp.zeros_like(h_cur)
        for _ in range(layers):
            h_cur, skip = run_layer(h_cur, li)
            ssum = ssum + skip
            li += 1
        group_s.append(ssum * skip_scale)                     # (C, Nt)

    # Three output heads as TWO block-diagonal matmuls.
    s_stack = jnp.concatenate(group_s, axis=0)                # (3C, Nt)
    hw = headw_ref[...]                                       # (3C+3, 3C) bf16
    t = jnp.maximum(jnp.dot(hw[:3 * C], s_stack.astype(jnp.bfloat16),
                            preferred_element_type=jnp.float32) + op1_b, 0.0)
    o_ref[...] = jnp.dot(hw[3 * C:], t.astype(jnp.bfloat16),
                         preferred_element_type=jnp.float32) + op2_b          # (3, Nt)


# -----------------------------------------------------------------------------
# Parameter init (deterministic, synthetic; matches module init quirks)
# -----------------------------------------------------------------------------

def init_params(key, *, channels=16, inputdim=1, side_dim=8, demb_dim=32,
                num_steps=50, layers=1):
    keys = jax.random.split(key, 128)
    it = iter(keys)

    def nrm(shape, scale=0.1):
        return scale * jax.random.normal(next(it), shape, dtype=jnp.float32)

    n_layers = 4 * layers
    params = {'channels': channels, 'layers': layers, 'inputdim': inputdim}

    # input_projection (Conv1d inputdim -> channels, k=1)
    params['in_w'] = nrm((channels, inputdim), 0.5)
    params['in_b'] = nrm((channels,))

    # DiffusionEmbedding: sin/cos table + two Linear/SiLU layers
    half = demb_dim // 2
    steps = jnp.arange(num_steps, dtype=jnp.float32)[:, None]
    freqs = 10.0 ** (jnp.arange(half, dtype=jnp.float32) / (half - 1) * 4.0)[None, :]
    table = steps * freqs
    params['diff_table'] = jnp.concatenate([jnp.sin(table), jnp.cos(table)], axis=1)
    params['de_w1'] = nrm((demb_dim, demb_dim))
    params['de_b1'] = nrm((demb_dim,))
    params['de_w2'] = nrm((demb_dim, demb_dim))
    params['de_b2'] = nrm((demb_dim,))

    # NoiseProject layers, stacked over the 4*layers residual layers (UN-merged).
    C2 = 2 * channels
    params['dp_w'] = nrm((n_layers, channels, demb_dim))      # diffusion_projection
    params['dp_b'] = nrm((n_layers, channels))
    params['mid_w'] = nrm((n_layers, C2, channels))           # mid_projection
    params['mid_b'] = nrm((n_layers, C2))
    params['cond_w'] = nrm((n_layers, C2, side_dim))          # cond_projection
    params['cond_b'] = nrm((n_layers, C2))
    params['out_w'] = nrm((n_layers, C2, channels))           # output_projection
    params['out_b'] = nrm((n_layers, C2))

    # output heads 1..3 (output_projection2_X weight is zero-initialized)
    params['op1_w'] = nrm((3, channels, channels))
    params['op1_b'] = nrm((3, channels))
    params['op2_w'] = jnp.zeros((3, 1, channels), jnp.float32)  # nn.init.zeros_
    params['op2_b'] = nrm((3, 1))
    return params


# -----------------------------------------------------------------------------
# Forward pass (is_itp = False)
# -----------------------------------------------------------------------------

def guide_diff_pm25_forward(params, x, side_info, diffusion_step,
                            itp_x=None, cond_mask=None):
    B, inputdim, K, L = x.shape
    assert inputdim == 1, "is_itp=False path expects inputdim == 1"
    C = params['channels']
    layers = params['layers']
    n_layers = 4 * layers
    C2 = 2 * C
    S = side_info.shape[1]
    N = K * L
    Nraw = B * N
    Nt = ((Nraw + 127) // 128) * 128           # lane-dense padding of merged lane axis
    pad = Nt - Nraw

    # ---- activations: batches merged onto the lane axis ----
    x_flat = jnp.transpose(x.reshape(B, inputdim, N).astype(jnp.float32),
                           (1, 0, 2)).reshape(inputdim, Nraw)
    side_flat = jnp.transpose(side_info.reshape(B, S, N).astype(jnp.float32),
                              (1, 0, 2)).reshape(S, Nraw)
    # per-batch indicator rows: lane j belongs to batch j // N
    ind = (jnp.arange(Nraw)[None, :] // N == jnp.arange(B)[:, None]).astype(jnp.float32)

    # ---- diffusion embedding (tiny -> plain JAX) ----
    demb = params['diff_table'][diffusion_step]                       # (B, D)
    demb = jax.nn.silu(demb @ params['de_w1'].T + params['de_b1'])
    demb = jax.nn.silu(demb @ params['de_w2'].T + params['de_b2'])
    # per-layer diffusion projection, folded through mid_w into the cond bias
    dp = jnp.einsum('bd,lcd->lcb', demb, params['dp_w']) + params['dp_b'][:, :, None]
    bias_cols = (jnp.einsum('loc,lcb->lob', params['mid_w'], dp)
                 + (params['mid_b'] + params['cond_b'])[:, :, None])  # (nl, 2C, B)

    # augmented cond projection: [W_cond | per-batch fused bias]; indicator rows
    # in side_aug select the right batch's bias column per lane.
    saug = S + B
    saug_p = ((saug + 15) // 16) * 16
    cond_w_aug = jnp.concatenate([params['cond_w'], bias_cols], axis=2)
    cond_w_aug = jnp.pad(cond_w_aug, ((0, 0), (0, 0), (0, saug_p - saug)))
    cond_w_aug = cond_w_aug.reshape(n_layers * C2, saug_p).astype(jnp.bfloat16)

    side_aug = jnp.concatenate([side_flat, ind], axis=0)              # (S+B, Nraw)
    side_aug = jnp.pad(side_aug, ((0, saug_p - saug), (0, pad))).astype(jnp.bfloat16)
    x_flat = jnp.pad(x_flat, ((0, 0), (0, pad)))

    # ---- weight slabs (bf16 matmul operands, f32 accumulate) ----
    mcw = jnp.concatenate([params['mid_w'].reshape(n_layers * C2, C),
                           params['out_w'].reshape(n_layers * C2, C)],
                          axis=0).astype(jnp.bfloat16)                # (2*nl*2C, C)

    op1_bd = jnp.zeros((3 * C, 3 * C), jnp.float32)
    op2_bd = jnp.zeros((3, 3 * C), jnp.float32)
    for gi in range(3):
        op1_bd = op1_bd.at[gi * C:(gi + 1) * C, gi * C:(gi + 1) * C].set(params['op1_w'][gi])
        op2_bd = op2_bd.at[gi, gi * C:(gi + 1) * C].set(params['op2_w'][gi, 0])
    headw = jnp.concatenate([op1_bd, op2_bd], axis=0).astype(jnp.bfloat16)   # (3C+3, 3C)

    # ---- one packed f32 bias/constant slab ----
    bias_slab = jnp.concatenate([
        params['in_w'].reshape(C, 1),
        params['in_b'].reshape(C, 1),
        params['out_b'].reshape(n_layers * C2, 1),
        params['op1_b'].reshape(3 * C, 1),
        params['op2_b'].reshape(3, 1),
    ], axis=0)
    bias_len = bias_slab.shape[0]

    heads = pl.pallas_call(
        functools.partial(_fused_forward_kernel, channels=C, layers=layers),
        out_shape=jax.ShapeDtypeStruct((3, Nt), jnp.float32),
        grid=(1,),
        in_specs=[
            pl.BlockSpec((inputdim, Nt), lambda i: (0, 0)),
            pl.BlockSpec((saug_p, Nt), lambda i: (0, 0)),
            pl.BlockSpec((n_layers * C2, saug_p), lambda i: (0, 0)),
            pl.BlockSpec((2 * n_layers * C2, C), lambda i: (0, 0)),
            pl.BlockSpec((3 * C + 3, 3 * C), lambda i: (0, 0)),
            pl.BlockSpec((bias_len, 1), lambda i: (0, 0)),
        ],
        out_specs=pl.BlockSpec((3, Nt), lambda i: (0, 0)),
        compiler_params=pltpu.CompilerParams(dimension_semantics=("arbitrary",)),
    )(x_flat, side_aug, cond_w_aug, mcw, headw, bias_slab)

    # final gather/concat/permute collapsed into one jnp.take
    heads = heads[:, :Nraw].reshape(3, B, K, L).transpose(1, 0, 2, 3).reshape(B, 3 * K, L)
    flat_idx = jnp.array(_build_flat_perm(K), dtype=jnp.int32)
    return jnp.take(heads, flat_idx, axis=1)                          # (B, K, L)


# -----------------------------------------------------------------------------
# Main
# -----------------------------------------------------------------------------

if __name__ == "__main__":
    key = jax.random.PRNGKey(0)
    B, K, L = 2, 36, 8                    # PM2.5 / AQI-36 requires K = 36 nodes
    channels, side_dim, demb_dim = 16, 8, 32
    num_steps, layers = 50, 1

    pkey, xkey, skey = jax.random.split(key, 3)
    params = init_params(pkey, channels=channels, inputdim=1, side_dim=side_dim,
                         demb_dim=demb_dim, num_steps=num_steps, layers=layers)

    x = jax.random.normal(xkey, (B, 1, K, L), dtype=jnp.float32)
    side_info = jax.random.normal(skey, (B, side_dim, K, L), dtype=jnp.float32)
    diffusion_step = jnp.array([3, 17], dtype=jnp.int32)
    itp_x = None       # is_itp = False
    cond_mask = None   # unused by the reference forward when is_itp = False

    out = guide_diff_pm25_forward(params, x, side_info, diffusion_step,
                                  itp_x, cond_mask)
    out = jax.block_until_ready(out)
    assert out.shape == (B, K, L) and out.dtype == jnp.float32
    assert bool(jnp.all(jnp.isfinite(out)))
    print("KERNEL_OK")
</pallas_src>

<mosaic_0001>
module attributes {stable_mosaic.version = 11 : i64} {
  func.func @_fused_forward_kernel(%arg0: i32, %arg1: memref<1x640xf32, #tpu.memory_space<vmem>>, %arg2: memref<16x640xbf16, #tpu.memory_space<vmem>>, %arg3: memref<128x16xbf16, #tpu.memory_space<vmem>>, %arg4: memref<256x16xbf16, #tpu.memory_space<vmem>>, %arg5: memref<51x48xbf16, #tpu.memory_space<vmem>>, %arg6: memref<211x1xf32, #tpu.memory_space<vmem>>, %arg7: memref<3x640xf32, #tpu.memory_space<vmem>>) attributes {dimension_semantics = [#tpu.dimension_semantics<arbitrary>], iteration_bounds = array<i64: 1>, scalar_prefetch = 0 : i64, scratch_operands = 0 : i64, tpu.core_type = #tpu.core_type<tc>, window_params = [{pipeline_mode = #tpu.pipeline_mode<synchronous>, transform_indices = @transform_0, window_bounds = array<i64: 1, 640>}, {pipeline_mode = #tpu.pipeline_mode<synchronous>, transform_indices = @transform_1, window_bounds = array<i64: 16, 640>}, {pipeline_mode = #tpu.pipeline_mode<synchronous>, transform_indices = @transform_2, window_bounds = array<i64: 128, 16>}, {pipeline_mode = #tpu.pipeline_mode<synchronous>, transform_indices = @transform_3, window_bounds = array<i64: 256, 16>}, {pipeline_mode = #tpu.pipeline_mode<synchronous>, transform_indices = @transform_4, window_bounds = array<i64: 51, 48>}, {pipeline_mode = #tpu.pipeline_mode<synchronous>, transform_indices = @transform_5, window_bounds = array<i64: 211, 1>}, {pipeline_mode = #tpu.pipeline_mode<synchronous>, transform_indices = @transform_6, window_bounds = array<i64: 3, 640>}]} {
    %c0 = arith.constant 0 : index
    %c0_0 = arith.constant 0 : index
    %0 = vector.load %arg6[%c0, %c0_0] : memref<211x1xf32, #tpu.memory_space<vmem>>, vector<211x1xf32>
    %1 = vector.extract_strided_slice %0 {offsets = [0, 0], sizes = [16, 1], strides = [1, 1]} : vector<211x1xf32> to vector<16x1xf32>
    %2 = vector.extract_strided_slice %0 {offsets = [16, 0], sizes = [16, 1], strides = [1, 1]} : vector<211x1xf32> to vector<16x1xf32>
    %3 = vector.extract_strided_slice %0 {offsets = [32, 0], sizes = [128, 1], strides = [1, 1]} : vector<211x1xf32> to vector<128x1xf32>
    %4 = vector.extract_strided_slice %0 {offsets = [160, 0], sizes = [48, 1], strides = [1, 1]} : vector<211x1xf32> to vector<48x1xf32>
    %5 = vector.extract_strided_slice %0 {offsets = [208, 0], sizes = [3, 1], strides = [1, 1]} : vector<211x1xf32> to vector<3x1xf32>
    %c0_1 = arith.constant 0 : index
    %c0_2 = arith.constant 0 : index
    %6 = vector.load %arg1[%c0_1, %c0_2] : memref<1x640xf32, #tpu.memory_space<vmem>>, vector<1x640xf32>
    %7 = vector.broadcast %1 : vector<16x1xf32> to vector<16x640xf32>
    %8 = vector.broadcast %6 : vector<1x640xf32> to vector<16x640xf32>
    %9 = arith.mulf %7, %8 : vector<16x640xf32>
    %10 = vector.broadcast %2 : vector<16x1xf32> to vector<16x640xf32>
    %11 = arith.addf %9, %10 : vector<16x640xf32>
    %cst = arith.constant 0.000000e+00 : f32
    %12 = vector.broadcast %cst : f32 to vector<16x640xf32>
    %13 = arith.maximumf %11, %12 : vector<16x640xf32>
    %c0_3 = arith.constant 0 : index
    %c0_4 = arith.constant 0 : index
    %14 = vector.load %arg3[%c0_3, %c0_4] : memref<128x16xbf16, #tpu.memory_space<vmem>>, vector<128x16xbf16>
    %c0_5 = arith.constant 0 : index
    %c0_6 = arith.constant 0 : index
    %15 = vector.load %arg2[%c0_5, %c0_6] : memref<16x640xbf16, #tpu.memory_space<vmem>>, vector<16x640xbf16>
    %cst_7 = arith.constant dense<0.000000e+00> : vector<128x640xf32>
    %16 = tpu.matmul %14, %15, %cst_7 {dimension_numbers = #tpu.dot_dimension_numbers<[1], [0], [0], [1], [0, 0, 1, 1], [], []>} : vector<128x16xbf16>, vector<16x640xbf16>, vector<128x640xf32> -> vector<128x640xf32>
    %c0_8 = arith.constant 0 : index
    %c0_9 = arith.constant 0 : index
    %17 = vector.load %arg4[%c0_8, %c0_9] : memref<256x16xbf16, #tpu.memory_space<vmem>>, vector<256x16xbf16>
    %18 = vector.extract_strided_slice %17 {offsets = [0, 0], sizes = [128, 16], strides = [1, 1]} : vector<256x16xbf16> to vector<128x16xbf16>
    %19 = vector.extract_strided_slice %17 {offsets = [128, 0], sizes = [128, 16], strides = [1, 1]} : vector<256x16xbf16> to vector<128x16xbf16>
    %cst_10 = arith.constant 0.000000e+00 : f32
    %20 = vector.broadcast %cst_10 : f32 to vector<16x640xf32>
    %21 = vector.extract_strided_slice %18 {offsets = [0, 0], sizes = [32, 16], strides = [1, 1]} : vector<128x16xbf16> to vector<32x16xbf16>
    %22 = arith.truncf %13 : vector<16x640xf32> to vector<16x640xbf16>
    %cst_11 = arith.constant dense<0.000000e+00> : vector<32x640xf32>
    %23 = tpu.matmul %21, %22, %cst_11 {dimension_numbers = #tpu.dot_dimension_numbers<[1], [0], [0], [1], [0, 0, 1, 1], [], []>} : vector<32x16xbf16>, vector<16x640xbf16>, vector<32x640xf32> -> vector<32x640xf32>
    %24 = vector.extract_strided_slice %16 {offsets = [0, 0], sizes = [32, 640], strides = [1, 1]} : vector<128x640xf32> to vector<32x640xf32>
    %25 = arith.addf %23, %24 : vector<32x640xf32>
    %26 = vector.extract_strided_slice %25 {offsets = [0, 0], sizes = [16, 640], strides = [1, 1]} : vector<32x640xf32> to vector<16x640xf32>
    %27 = vector.extract_strided_slice %25 {offsets = [16, 0], sizes = [16, 640], strides = [1, 1]} : vector<32x640xf32> to vector<16x640xf32>
    %cst_12 = arith.constant 0.000000e+00 : f32
    %28 = vector.broadcast %cst_12 : f32 to vector<16x640xf32>
    %29 = arith.subf %28, %26 : vector<16x640xf32>
    %30 = math.exp %29 : vector<16x640xf32>
    %cst_13 = arith.constant 1.000000e+00 : f32
    %31 = vector.broadcast %cst_13 : f32 to vector<16x640xf32>
    %32 = arith.addf %31, %30 : vector<16x640xf32>
    %33 = tpu.reciprocal %32 {approx = true} : vector<16x640xf32> -> vector<16x640xf32>
    %34 = math.tanh %27 : vector<16x640xf32>
    %35 = arith.mulf %33, %34 : vector<16x640xf32>
    %36 = vector.extract_strided_slice %19 {offsets = [0, 0], sizes = [32, 16], strides = [1, 1]} : vector<128x16xbf16> to vector<32x16xbf16>
    %37 = arith.truncf %35 : vector<16x640xf32> to vector<16x640xbf16>
    %cst_14 = arith.constant dense<0.000000e+00> : vector<32x640xf32>
    %38 = tpu.matmul %36, %37, %cst_14 {dimension_numbers = #tpu.dot_dimension_numbers<[1], [0], [0], [1], [0, 0, 1, 1], [], []>} : vector<32x16xbf16>, vector<16x640xbf16>, vector<32x640xf32> -> vector<32x640xf32>
    %39 = vector.extract_strided_slice %3 {offsets = [0, 0], sizes = [32, 1], strides = [1, 1]} : vector<128x1xf32> to vector<32x1xf32>
    %40 = vector.broadcast %39 : vector<32x1xf32> to vector<32x640xf32>
    %41 = arith.addf %38, %40 : vector<32x640xf32>
    %42 = vector.extract_strided_slice %41 {offsets = [16, 0], sizes = [16, 640], strides = [1, 1]} : vector<32x640xf32> to vector<16x640xf32>
    %43 = arith.addf %20, %42 : vector<16x640xf32>
    %cst_15 = arith.constant 1.000000e+00 : f32
    %44 = vector.broadcast %cst_15 : f32 to vector<16x640xf32>
    %45 = arith.mulf %43, %44 : vector<16x640xf32>
    %cst_16 = arith.constant 0.000000e+00 : f32
    %46 = vector.broadcast %cst_16 : f32 to vector<16x640xf32>
    %47 = vector.extract_strided_slice %18 {offsets = [32, 0], sizes = [32, 16], strides = [1, 1]} : vector<128x16xbf16> to vector<32x16xbf16>
    %48 = arith.truncf %45 : vector<16x640xf32> to vector<16x640xbf16>
    %cst_17 = arith.constant dense<0.000000e+00> : vector<32x640xf32>
    %49 = tpu.matmul %47, %48, %cst_17 {dimension_numbers = #tpu.dot_dimension_numbers<[1], [0], [0], [1], [0, 0, 1, 1], [], []>} : vector<32x16xbf16>, vector<16x640xbf16>, vector<32x640xf32> -> vector<32x640xf32>
    %50 = vector.extract_strided_slice %16 {offsets = [32, 0], sizes = [32, 640], strides = [1, 1]} : vector<128x640xf32> to vector<32x640xf32>
    %51 = arith.addf %49, %50 : vector<32x640xf32>
    %52 = vector.extract_strided_slice %51 {offsets = [0, 0], sizes = [16, 640], strides = [1, 1]} : vector<32x640xf32> to vector<16x640xf32>
    %53 = vector.extract_strided_slice %51 {offsets = [16, 0], sizes = [16, 640], strides = [1, 1]} : vector<32x640xf32> to vector<16x640xf32>
    %cst_18 = arith.constant 0.000000e+00 : f32
    %54 = vector.broadcast %cst_18 : f32 to vector<16x640xf32>
    %55 = arith.subf %54, %52 : vector<16x640xf32>
    %56 = math.exp %55 : vector<16x640xf32>
    %cst_19 = arith.constant 1.000000e+00 : f32
    %57 = vector.broadcast %cst_19 : f32 to vector<16x640xf32>
    %58 = arith.addf %57, %56 : vector<16x640xf32>
    %59 = tpu.reciprocal %58 {approx = true} : vector<16x640xf32> -> vector<16x640xf32>
    %60 = math.tanh %53 : vector<16x640xf32>
    %61 = arith.mulf %59, %60 : vector<16x640xf32>
    %62 = vector.extract_strided_slice %19 {offsets = [32, 0], sizes = [32, 16], strides = [1, 1]} : vector<128x16xbf16> to vector<32x16xbf16>
    %63 = arith.truncf %61 : vector<16x640xf32> to vector<16x640xbf16>
    %cst_20 = arith.constant dense<0.000000e+00> : vector<32x640xf32>
    %64 = tpu.matmul %62, %63, %cst_20 {dimension_numbers = #tpu.dot_dimension_numbers<[1], [0], [0], [1], [0, 0, 1, 1], [], []>} : vector<32x16xbf16>, vector<16x640xbf16>, vector<32x640xf32> -> vector<32x640xf32>
    %65 = vector.extract_strided_slice %3 {offsets = [32, 0], sizes = [32, 1], strides = [1, 1]} : vector<128x1xf32> to vector<32x1xf32>
    %66 = vector.broadcast %65 : vector<32x1xf32> to vector<32x640xf32>
    %67 = arith.addf %64, %66 : vector<32x640xf32>
    %68 = vector.extract_strided_slice %67 {offsets = [0, 0], sizes = [16, 640], strides = [1, 1]} : vector<32x640xf32> to vector<16x640xf32>
    %69 = arith.addf %45, %68 : vector<16x640xf32>
    %cst_21 = arith.constant 0.707106769 : f32
    %70 = vector.broadcast %cst_21 : f32 to vector<16x640xf32>
    %71 = arith.mulf %69, %70 : vector<16x640xf32>
    %72 = vector.extract_strided_slice %67 {offsets = [16, 0], sizes = [16, 640], strides = [1, 1]} : vector<32x640xf32> to vector<16x640xf32>
    %73 = arith.addf %46, %72 : vector<16x640xf32>
    %cst_22 = arith.constant 1.000000e+00 : f32
    %74 = vector.broadcast %cst_22 : f32 to vector<16x640xf32>
    %75 = arith.mulf %73, %74 : vector<16x640xf32>
    %cst_23 = arith.constant 0.000000e+00 : f32
    %76 = vector.broadcast %cst_23 : f32 to vector<16x640xf32>
    %77 = vector.extract_strided_slice %18 {offsets = [64, 0], sizes = [32, 16], strides = [1, 1]} : vector<128x16xbf16> to vector<32x16xbf16>
    %78 = arith.truncf %71 : vector<16x640xf32> to vector<16x640xbf16>
    %cst_24 = arith.constant dense<0.000000e+00> : vector<32x640xf32>
    %79 = tpu.matmul %77, %78, %cst_24 {dimension_numbers = #tpu.dot_dimension_numbers<[1], [0], [0], [1], [0, 0, 1, 1], [], []>} : vector<32x16xbf16>, vector<16x640xbf16>, vector<32x640xf32> -> vector<32x640xf32>
    %80 = vector.extract_strided_slice %16 {offsets = [64, 0], sizes = [32, 640], strides = [1, 1]} : vector<128x640xf32> to vector<32x640xf32>
    %81 = arith.addf %79, %80 : vector<32x640xf32>
    %82 = vector.extract_strided_slice %81 {offsets = [0, 0], sizes = [16, 640], strides = [1, 1]} : vector<32x640xf32> to vector<16x640xf32>
    %83 = vector.extract_strided_slice %81 {offsets = [16, 0], sizes = [16, 640], strides = [1, 1]} : vector<32x640xf32> to vector<16x640xf32>
    %cst_25 = arith.constant 0.000000e+00 : f32
    %84 = vector.broadcast %cst_25 : f32 to vector<16x640xf32>
    %85 = arith.subf %84, %82 : vector<16x640xf32>
    %86 = math.exp %85 : vector<16x640xf32>
    %cst_26 = arith.constant 1.000000e+00 : f32
    %87 = vector.broadcast %cst_26 : f32 to vector<16x640xf32>
    %88 = arith.addf %87, %86 : vector<16x640xf32>
    %89 = tpu.reciprocal %88 {approx = true} : vector<16x640xf32> -> vector<16x640xf32>
    %90 = math.tanh %83 : vector<16x640xf32>
    %91 = arith.mulf %89, %90 : vector<16x640xf32>
    %92 = vector.extract_strided_slice %19 {offsets = [64, 0], sizes = [32, 16], strides = [1, 1]} : vector<128x16xbf16> to vector<32x16xbf16>
    %93 = arith.truncf %91 : vector<16x640xf32> to vector<16x640xbf16>
    %cst_27 = arith.constant dense<0.000000e+00> : vector<32x640xf32>
    %94 = tpu.matmul %92, %93, %cst_27 {dimension_numbers = #tpu.dot_dimension_numbers<[1], [0], [0], [1], [0, 0, 1, 1], [], []>} : vector<32x16xbf16>, vector<16x640xbf16>, vector<32x640xf32> -> vector<32x640xf32>
    %95 = vector.extract_strided_slice %3 {offsets = [64, 0], sizes = [32, 1], strides = [1, 1]} : vector<128x1xf32> to vector<32x1xf32>
    %96 = vector.broadcast %95 : vector<32x1xf32> to vector<32x640xf32>
    %97 = arith.addf %94, %96 : vector<32x640xf32>
    %98 = vector.extract_strided_slice %97 {offsets = [0, 0], sizes = [16, 640], strides = [1, 1]} : vector<32x640xf32> to vector<16x640xf32>
    %99 = arith.addf %71, %98 : vector<16x640xf32>
    %cst_28 = arith.constant 0.707106769 : f32
    %100 = vector.broadcast %cst_28 : f32 to vector<16x640xf32>
    %101 = arith.mulf %99, %100 : vector<16x640xf32>
    %102 = vector.extract_strided_slice %97 {offsets = [16, 0], sizes = [16, 640], strides = [1, 1]} : vector<32x640xf32> to vector<16x640xf32>
    %103 = arith.addf %76, %102 : vector<16x640xf32>
    %cst_29 = arith.constant 1.000000e+00 : f32
    %104 = vector.broadcast %cst_29 : f32 to vector<16x640xf32>
    %105 = arith.mulf %103, %104 : vector<16x640xf32>
    %cst_30 = arith.constant 0.000000e+00 : f32
    %106 = vector.broadcast %cst_30 : f32 to vector<16x640xf32>
    %107 = vector.extract_strided_slice %18 {offsets = [96, 0], sizes = [32, 16], strides = [1, 1]} : vector<128x16xbf16> to vector<32x16xbf16>
    %108 = arith.truncf %101 : vector<16x640xf32> to vector<16x640xbf16>
    %cst_31 = arith.constant dense<0.000000e+00> : vector<32x640xf32>
    %109 = tpu.matmul %107, %108, %cst_31 {dimension_numbers = #tpu.dot_dimension_numbers<[1], [0], [0], [1], [0, 0, 1, 1], [], []>} : vector<32x16xbf16>, vector<16x640xbf16>, vector<32x640xf32> -> vector<32x640xf32>
    %110 = vector.extract_strided_slice %16 {offsets = [96, 0], sizes = [32, 640], strides = [1, 1]} : vector<128x640xf32> to vector<32x640xf32>
    %111 = arith.addf %109, %110 : vector<32x640xf32>
    %112 = vector.extract_strided_slice %111 {offsets = [0, 0], sizes = [16, 640], strides = [1, 1]} : vector<32x640xf32> to vector<16x640xf32>
    %113 = vector.extract_strided_slice %111 {offsets = [16, 0], sizes = [16, 640], strides = [1, 1]} : vector<32x640xf32> to vector<16x640xf32>
    %cst_32 = arith.constant 0.000000e+00 : f32
    %114 = vector.broadcast %cst_32 : f32 to vector<16x640xf32>
    %115 = arith.subf %114, %112 : vector<16x640xf32>
    %116 = math.exp %115 : vector<16x640xf32>
    %cst_33 = arith.constant 1.000000e+00 : f32
    %117 = vector.broadcast %cst_33 : f32 to vector<16x640xf32>
    %118 = arith.addf %117, %116 : vector<16x640xf32>
    %119 = tpu.reciprocal %118 {approx = true} : vector<16x640xf32> -> vector<16x640xf32>
    %120 = math.tanh %113 : vector<16x640xf32>
    %121 = arith.mulf %119, %120 : vector<16x640xf32>
    %122 = vector.extract_strided_slice %19 {offsets = [96, 0], sizes = [32, 16], strides = [1, 1]} : vector<128x16xbf16> to vector<32x16xbf16>
    %123 = arith.truncf %121 : vector<16x640xf32> to vector<16x640xbf16>
    %cst_34 = arith.constant dense<0.000000e+00> : vector<32x640xf32>
    %124 = tpu.matmul %122, %123, %cst_34 {dimension_numbers = #tpu.dot_dimension_numbers<[1], [0], [0], [1], [0, 0, 1, 1], [], []>} : vector<32x16xbf16>, vector<16x640xbf16>, vector<32x640xf32> -> vector<32x640xf32>
    %125 = vector.extract_strided_slice %3 {offsets = [96, 0], sizes = [32, 1], strides = [1, 1]} : vector<128x1xf32> to vector<32x1xf32>
    %126 = vector.broadcast %125 : vector<32x1xf32> to vector<32x640xf32>
    %127 = arith.addf %124, %126 : vector<32x640xf32>
    %128 = vector.extract_strided_slice %127 {offsets = [16, 0], sizes = [16, 640], strides = [1, 1]} : vector<32x640xf32> to vector<16x640xf32>
    %129 = arith.addf %106, %128 : vector<16x640xf32>
    %cst_35 = arith.constant 1.000000e+00 : f32
    %130 = vector.broadcast %cst_35 : f32 to vector<16x640xf32>
    %131 = arith.mulf %129, %130 : vector<16x640xf32>
    %132 = tpu.concatenate %75, %105, %131 in 0 : vector<16x640xf32>, vector<16x640xf32>, vector<16x640xf32> -> vector<48x640xf32>
    %c0_36 = arith.constant 0 : index
    %c0_37 = arith.constant 0 : index
    %133 = vector.load %arg5[%c0_36, %c0_37] : memref<51x48xbf16, #tpu.memory_space<vmem>>, vector<51x48xbf16>
    %134 = vector.extract_strided_slice %133 {offsets = [0, 0], sizes = [48, 48], strides = [1, 1]} : vector<51x48xbf16> to vector<48x48xbf16>
    %135 = arith.truncf %132 : vector<48x640xf32> to vector<48x640xbf16>
    %cst_38 = arith.constant dense<0.000000e+00> : vector<48x640xf32>
    %136 = tpu.matmul %134, %135, %cst_38 {dimension_numbers = #tpu.dot_dimension_numbers<[1], [0], [0], [1], [0, 0, 1, 1], [], []>} : vector<48x48xbf16>, vector<48x640xbf16>, vector<48x640xf32> -> vector<48x640xf32>
    %137 = vector.broadcast %4 : vector<48x1xf32> to vector<48x640xf32>
    %138 = arith.addf %136, %137 : vector<48x640xf32>
    %cst_39 = arith.constant 0.000000e+00 : f32
    %139 = vector.broadcast %cst_39 : f32 to vector<48x640xf32>
    %140 = arith.maximumf %138, %139 : vector<48x640xf32>
    %141 = vector.extract_strided_slice %133 {offsets = [48, 0], sizes = [3, 48], strides = [1, 1]} : vector<51x48xbf16> to vector<3x48xbf16>
    %142 = arith.truncf %140 : vector<48x640xf32> to vector<48x640xbf16>
    %cst_40 = arith.constant dense<0.000000e+00> : vector<3x640xf32>
    %143 = tpu.matmul %141, %142, %cst_40 {dimension_numbers = #tpu.dot_dimension_numbers<[1], [0], [0], [1], [0, 0, 1, 1], [], []>} : vector<3x48xbf16>, vector<48x640xbf16>, vector<3x640xf32> -> vector<3x640xf32>
    %144 = vector.broadcast %5 : vector<3x1xf32> to vector<3x640xf32>
    %145 = arith.addf %143, %144 : vector<3x640xf32>
    %c0_41 = arith.constant 0 : index
    %c0_42 = arith.constant 0 : index
    %146 = vector.load %arg7[%c0_41, %c0_42] : memref<3x640xf32, #tpu.memory_space<vmem>>, vector<3x640xf32>
    tpu.vector_store %arg7[%c0_41, %c0_42], %145 {strides = array<i32>} : memref<3x640xf32, #tpu.memory_space<vmem>>, vector<3x640xf32>,
    return
  }
  func.func @transform_0(%arg0: i32) -> (i32, i32) {
    %c0_i32 = arith.constant 0 : i32
    %c0_i32_0 = arith.constant 0 : i32
    %c0_i32_1 = arith.constant 0 : i32
    return %c0_i32, %c0_i32_0 : i32, i32
  }
  func.func @transform_1(%arg0: i32) -> (i32, i32) {
    %c0_i32 = arith.constant 0 : i32
    %c0_i32_0 = arith.constant 0 : i32
    %c0_i32_1 = arith.constant 0 : i32
    return %c0_i32, %c0_i32_0 : i32, i32
  }
  func.func @transform_2(%arg0: i32) -> (i32, i32) {
    %c0_i32 = arith.constant 0 : i32
    %c0_i32_0 = arith.constant 0 : i32
    %c0_i32_1 = arith.constant 0 : i32
    return %c0_i32, %c0_i32_0 : i32, i32
  }
  func.func @transform_3(%arg0: i32) -> (i32, i32) {
    %c0_i32 = arith.constant 0 : i32
    %c0_i32_0 = arith.constant 0 : i32
    %c0_i32_1 = arith.constant 0 : i32
    return %c0_i32, %c0_i32_0 : i32, i32
  }
  func.func @transform_4(%arg0: i32) -> (i32, i32) {
    %c0_i32 = arith.constant 0 : i32
    %c0_i32_0 = arith.constant 0 : i32
    %c0_i32_1 = arith.constant 0 : i32
    return %c0_i32, %c0_i32_0 : i32, i32
  }
  func.func @transform_5(%arg0: i32) -> (i32, i32) {
    %c0_i32 = arith.constant 0 : i32
    %c0_i32_0 = arith.constant 0 : i32
    %c0_i32_1 = arith.constant 0 : i32
    return %c0_i32, %c0_i32_0 : i32, i32
  }
  func.func @transform_6(%arg0: i32) -> (i32, i32) {
    %c0_i32 = arith.constant 0 : i32
    %c0_i32_0 = arith.constant 0 : i32
    %c0_i32_1 = arith.constant 0 : i32
    return %c0_i32, %c0_i32_0 : i32, i32
  }
}

</mosaic_0001>

<bundles_post_ra>
// kernel: tpu_custom_call.1
= control target key start
LH: loop header
LB: loop body
LE: loop exit
PB: predicated region body
PF: predicated region fallthrough
CT: control target
= control target key end

     0   :  { %v2765_v3 = vmov 0   ;;  %vm202_vm0 = vcmask 130048   ;;  %s3692_s0 = inlined_call_operand.vmem [shape: f32[1,640], index: 0, kind: input, shape index: {}]   ;;  %s3693_s1 = inlined_call_operand.vmem [shape: bf16[16,640], index: 1, kind: input, shape index: {}]   ;;  %s3694_s2 = inlined_call_operand.vmem [shape: bf16[128,16], index: 2, kind: input, shape index: {}]   ;;  %s3695_s3 = inlined_call_operand.vmem [shape: bf16[256,16], index: 3, kind: input, shape index: {}]   ;;  %s3696_s4 = inlined_call_operand.vmem [shape: bf16[51,48], index: 4, kind: input, shape index: {}]   ;;  %s3697_s5 = inlined_call_operand.vmem [shape: f32[211,1], index: 5, kind: input, shape index: {}]   ;;  %s3698_s6 = inlined_call_operand.hbm [shape: f32[3,640], index: 6, kind: output, shape index: {}]  }
   0x1   :  { %v27_v0 = vld [vmem:[%s3697_s5 + $0x10] sm:$0xff]  ;;  %v25_v1 = vld [vmem:[%s3697_s5] sm:$0xff]  ;;  %2497 = vset.pattern.permute.xlu1 %v2765_v3  ;;  %2496 = vset.pattern.permute.xlu0 %v2765_v3  ;;  %v2229_v6 = vld [vmem:[%s3693_s1 + $0x14] sm:$0xf0] }
   0x2   :  { %v2227_v2 = vld [vmem:[%s3693_s1] sm:$0xf]  ;;  %v2471_v4 = vld [vmem:[%s3693_s1 + $0x10] sm:$0xf0]  ;;  %v2469_v5 = vld [vmem:[%s3693_s1 + $0x4] sm:$0xf]  ;;  %86 = vperm.xlu1 %2497, %v27_v0   ;;  %55 = vperm.xlu0 %2496, %v25_v1  }
   0x3   :  { %v2228_v7 = vor.u32 %v2471_v4, %v2227_v2  ;;  %v2232_v8 = vor.u32 %v2469_v5, %v2229_v6  ;;  %v2235_v9 = vld [vmem:[%s3693_s1 + $0x8] sm:$0xf]  ;;  %v2472_v10 = vld [vmem:[%s3693_s1 + $0x18] sm:$0xf0]  ;;  %v2834_v13 = vld [vmem:[%s3694_s2] sm:$0xff]  ;;  %2498 = vset.pattern.permute.xlu2 %v2765_v3 }
   0x4   :  { %v2236_v11 = vor.u32 %v2472_v10, %v2235_v9  ;;  %v2829_v12 = vld [vmem:[%s3694_s2 + $0x38] sm:$0xff]  ;;  %v2470_v14 = vld [vmem:[%s3693_s1 + $0xc] sm:$0xf]  ;;  %v2237_v15 = vld [vmem:[%s3693_s1 + $0x1c] sm:$0xf0] }
   0x5   :  { %2493 = vmatpush.bf16.msra.mxu3 %v2228_v7  ;;  %283 = vmatpush.bf16.msra.mxu1 %v2232_v8  ;;  %v2240_v16 = vor.u32 %v2470_v14, %v2237_v15  ;;  %v28_v17 = vld [vmem:[%s3697_s5 + $0x18] sm:$0xff]  ;;  %v26_v18 = vld [vmem:[%s3697_s5 + $0x8] sm:$0xff] }
   0x6   :  { %332 = vmatpush.bf16.msra.mxu2 %v2236_v11  ;;  %234 = vmatpush.bf16.msra.mxu0 %v2228_v7 }
   0x8   :  { %2252 = vmatmul.msk.bf16.vlgmr.msra.gmra.mxu3 %vm202_vm0, %v2829_v12  ;;  %2253 = vmatmul.msk.bf16.vlgmr.msra.gmra.mxu1 %vm202_vm0, %v2834_v13 }
   0x9   :  { %11 = vsyncpa [#allocation3], 0  ;;  %2261 = vmatmul.msk.bf16.vlgmr.msra.gmra.mxu2 %vm202_vm0, %v2834_v13  ;;  %381 = vmatpush.bf16.msrb.mxu3 %v2240_v16  ;;  %v34_v19 = vld [vmem:[%s3697_s5 + $0x48] sm:$0xff]  ;;  %v33_v20 = vld [vmem:[%s3697_s5 + $0x40] sm:$0xff]  ;;  %vm1915_vm1 = vcmask 392192   ;;  %vm2169_vm2 = vcmask 1043456  }
   0xa   :  { %2245 = vmatmul.msk.bf16.vlgmr.msra.gmra.mxu0 %vm202_vm0, %v2834_v13  ;;  %91 = vperm.xlu1 %2497, %v28_v17   ;;  %v2865_v21 = vld [vmem:[%s3694_s2 + $0x8] sm:$0xff]  ;;  %v43_v22 = vld [vmem:[%s3697_s5 + $0x90] sm:$0xff]  ;;  %v40_v24 = vld [vmem:[%s3697_s5 + $0x78] sm:$0xff]  ;;  %s2184_s17 = sshll.u32 %s3698_s6, 4  ;;  %s2185_s17 = int_to_ptr.hbm [resolvable:$true] %s2184_s17 }
   0xb   :  { %60 = vperm.xlu0 %2496, %v26_v18   ;;  %v38_v23 = vld [vmem:[%s3697_s5 + $0x68] sm:$0xff]  ;;  %v39_v25 = vld [vmem:[%s3697_s5 + $0x70] sm:$0xff]  ;;  %v49_v27 = vld [vmem:[%s3697_s5 + $0xc0] sm:$0xff] }
   0xc   :  { %v2890_v26 = vld [vmem:[%s3694_s2 + $0x10] sm:$0xff]  ;;  %v36_v28 = vld [vmem:[%s3697_s5 + $0x58] sm:$0xff]  ;;  %v46_v33 = vld [vmem:[%s3697_s5 + $0xa8] sm:$0xff] }
   0xd   :  { %v48_v29 = vld [vmem:[%s3697_s5 + $0xb8] sm:$0xff]  ;;  %v47_v30 = vld [vmem:[%s3697_s5 + $0xb0] sm:$0xff]  ;;  %v2934_v34 = vld [vmem:[%s3694_s2 + $0x20] sm:$0xff] }
   0xe   :  { %v2915_v31 = vld [vmem:[%s3694_s2 + $0x18] sm:$0xff]  ;;  %v51_v32 = vld [vmem:[%s3697_s5 + $0xd0] sm:$0x7]  ;;  %v2947_v35 = vld [vmem:[%s3694_s2 + $0x28] sm:$0xff] }
   0xf   :  { %v2960_v36 = vld [vmem:[%s3694_s2 + $0x30] sm:$0xff]  ;;  %v52_v37 = vld [vmem:[%s3692_s0] sm:$0x1f] }
  0x10   :  { %v64_v38 = vperm.slane %v52_v37, 0  ;;  %v66_v40 = vperm.slane %v52_v37, 2  ;;  %v67_v41 = vperm.slane %v52_v37, 3  ;;  %v68_v42 = vperm.slane %v52_v37, 4 }
  0x11   :  { %v65_v45 = vperm.slane %v52_v37, 1 }
  0x12   :  { %1022 = vperm.xlu1 %2497, %v34_v19  }
  0x13   :  { %1017 = vperm.xlu0 %2496, %v33_v20   ;;  %v2474_v20 = vld [vmem:[%s3695_s3] sm:$0xff] }
  0x18   :  { %2269 = vmatmul.msk.bf16.vlgmr.msrb.gmra.mxu3 %vm202_vm0, %v2834_v13  ;;  %2254 = vmatmul.msk.bf16.gmra.mxu1 %vm202_vm0, %v2865_v21 }
  0x19   :  { %2262 = vmatmul.msk.bf16.gmra.mxu2 %vm202_vm0, %v2865_v21 }
  0x1a   :  { %2246 = vmatmul.msk.bf16.gmra.mxu0 %vm202_vm0, %v2865_v21  ;;  %1729 = vperm.xlu1 %2497, %v43_v22  }
  0x1b   :  { %1374 = vperm.xlu0 %2496, %v38_v23  }
  0x22   :  { %1384 = vperm.xlu1 %2497, %v40_v24   ;;  %v2243_v24 = vld [vmem:[%s3693_s1 + $0x10] sm:$0xf] }
  0x23   :  { %1379 = vperm.xlu0 %2496, %v39_v25   ;;  %v2473_v25 = vld [vmem:[%s3693_s1 + $0x20] sm:$0xf0] }
  0x28   :  { %2270 = vmatmul.msk.bf16.gmra.mxu3 %vm202_vm0, %v2865_v21  ;;  %2255 = vmatmul.msk.bf16.gmra.mxu1 %vm202_vm0, %v2890_v26 }
  0x29   :  { %2263 = vmatmul.msk.bf16.gmra.mxu2 %vm202_vm0, %v2890_v26 }
  0x2a   :  { %2247 = vmatmul.msk.bf16.gmra.mxu0 %vm202_vm0, %v2890_v26  ;;  %1892 = vperm.xlu1 %2497, %v49_v27  }
  0x2b   :  { %1032 = vperm.xlu0 %2496, %v36_v28   ;;  %v2244_v28 = vor.u32 %v2473_v25, %v2243_v24 }
  0x2d   :  { %430 = vmatpush.bf16.msrb.mxu0 %v2244_v28 }
  0x32   :  { %1887 = vperm.xlu1 %2497, %v48_v29  }
  0x33   :  { %1882 = vperm.xlu0 %2496, %v47_v30  }
  0x38   :  { %2271 = vmatmul.msk.bf16.gmra.mxu3 %vm202_vm0, %v2890_v26  ;;  %2256 = vmatmul.msk.bf16.gmra.mxu1 %vm202_vm0, %v2915_v31 }
  0x39   :  { %2264 = vmatmul.msk.bf16.gmra.mxu2 %vm202_vm0, %v2915_v31 }
  0x3a   :  { %2248 = vmatmul.msk.bf16.gmra.mxu0 %vm202_vm0, %v2915_v31  ;;  %2092 = vperm.xlu1 %2497, %v51_v32  }
  0x3b   :  { %1877 = vperm.xlu0 %2496, %v46_v33   ;;  %v2475_v33 = vld [vmem:[%s3695_s3 + $0x8] sm:$0xff] }
  0x48   :  { %2272 = vmatmul.msk.bf16.gmra.mxu3 %vm202_vm0, %v2915_v31  ;;  %2257 = vmatmul.msk.bf16.gmra.mxu1 %vm202_vm0, %v2934_v34 }
  0x49   :  { %2265 = vmatmul.msk.bf16.gmra.mxu2 %vm202_vm0, %v2934_v34 }
  0x4a   :  { %2249 = vmatmul.msk.bf16.gmra.mxu0 %vm202_vm0, %v2934_v34 }
  0x58   :  { %2273 = vmatmul.msk.bf16.gmra.mxu3 %vm202_vm0, %v2934_v34  ;;  %2258 = vmatmul.msk.bf16.gmra.mxu1 %vm202_vm0, %v2947_v35 }
  0x59   :  { %2266 = vmatmul.msk.bf16.gmra.mxu2 %vm202_vm0, %v2947_v35 }
  0x5a   :  { %2250 = vmatmul.msk.bf16.gmra.mxu0 %vm202_vm0, %v2947_v35 }
  0x68   :  { %2274 = vmatmul.msk.bf16.gmra.mxu3 %vm202_vm0, %v2947_v35  ;;  %2259 = vmatmul.msk.bf16.gmra.mxu1 %vm202_vm0, %v2960_v36 }
  0x69   :  { %2267 = vmatmul.msk.bf16.gmra.mxu2 %vm202_vm0, %v2960_v36 }
  0x6a   :  { %2251 = vmatmul.msk.bf16.gmra.mxu0 %vm202_vm0, %v2960_v36 }
  0x74   :  { %v87_v39 = vpop.permute.xlu1 %86  ;;  %v56_v43 = vpop.permute.xlu0 %55 }
  0x75   :  { %v74_v44 = vmul.f32 %v64_v38, %v56_v43  ;;  %v76_v46 = vmul.f32 %v66_v40, %v56_v43  ;;  %v77_v47 = vmul.f32 %v67_v41, %v56_v43  ;;  %v78_v48 = vmul.f32 %v68_v42, %v56_v43 }
  0x76   :  { %v75_v50 = vmul.f32 %v65_v45, %v56_v43 }
  0x77   :  { %v94_v49 = vadd.f32 %v87_v39, %v74_v44  ;;  %v96_v52 = vadd.f32 %v87_v39, %v76_v46  ;;  %v97_v53 = vadd.f32 %v87_v39, %v77_v47  ;;  %v98_v54 = vadd.f32 %v87_v39, %v78_v48 }
  0x78   :  { %2275 = vmatmul.msk.bf16.gmra.mxu3 %vm202_vm0, %v2960_v36  ;;  %2260 = vmatmul.msk.bf16.gmra.mxu1 %vm202_vm0, %v2829_v12  ;;  %v95_v62 = vadd.f32 %v87_v39, %v75_v50 }
  0x79   :  { %2268 = vmatmul.msk.bf16.gmra.mxu2 %vm202_vm0, %v2829_v12  ;;  %v104_v60 = vmax.f32 %v94_v49, 0.0  ;;  %v106_v4 = vmax.f32 %v96_v52, 0.0  ;;  %v107_v5 = vmax.f32 %v97_v53, 0.0  ;;  %v108_v6 = vmax.f32 %v98_v54, 0.0 }
  0x7a   :  { %v105_v11 = vmax.f32 %v95_v62, 0.0  ;;  %2277 = vmatmul.msk.bf16.vlgmr.msrb.gmra.mxu0 %vm202_vm0, %v2834_v13 }
  0x7c   :  { %v92_v59 = vpop.permute.xlu1 %91 }
  0x7d   :  { %v61_v51 = vpop.permute.xlu0 %60 }
  0x7e   :  { %v81_v55 = vmul.f32 %v66_v40, %v61_v51  ;;  %v82_v56 = vmul.f32 %v67_v41, %v61_v51  ;;  %v83_v57 = vmul.f32 %v68_v42, %v61_v51  ;;  %v79_v58 = vmul.f32 %v64_v38, %v61_v51 }
  0x7f   :  { %v80_v61 = vmul.f32 %v65_v45, %v61_v51 }
  0x80   :  { %v99_v63 = vadd.f32 %v92_v59, %v79_v58  ;;  %v101_v0 = vadd.f32 %v92_v59, %v81_v55  ;;  %v102_v1 = vadd.f32 %v92_v59, %v82_v56  ;;  %v103_v2 = vadd.f32 %v92_v59, %v83_v57 }
  0x81   :  { %v100_v3 = vadd.f32 %v92_v59, %v80_v61 }
  0x82   :  { %v109_v7 = vmax.f32 %v99_v63, 0.0  ;;  %v111_v8 = vmax.f32 %v101_v0, 0.0  ;;  %v112_v9 = vmax.f32 %v102_v1, 0.0  ;;  %v113_v10 = vmax.f32 %v103_v2, 0.0 }
  0x83   :  { %v110_v14 = vmax.f32 %v100_v3, 0.0 }
  0x84   :  { %v504_v15 = vpack.c.bf16 %v109_v7, %v104_v60  ;;  %v506_v16 = vpack.c.bf16 %v111_v8, %v106_v4  ;;  %v507_v17 = vpack.c.bf16 %v112_v9, %v107_v5  ;;  %v508_v18 = vpack.c.bf16 %v113_v10, %v108_v6 }
  0x85   :  { %v505_v19 = vpack.c.bf16 %v110_v14, %v105_v11  ;;  %v2982_v22 = vpop.f32.mrf.mxu1 }
  0x86   :  { %532 = vmatpush.bf16.msrb.mxu1 %v504_v15  ;;  %570 = vmatpush.bf16.msra.mxu3 %v506_v16 }
  0x87   :  { %551 = vmatpush.bf16.msrb.mxu2 %v505_v19  ;;  %v3016_v39 = vpop.f32.mrf.mxu0 }
  0x88   :  { %2276 = vmatmul.msk.bf16.gmra.mxu3 %vm202_vm0, %v2829_v12 }
  0x89   :  { %2293 = vmatmul.msk.bf16.vlgmr.msrb.gmra.mxu1 %vm202_vm0, %v2474_v20 }
  0x8a   :  { %589 = vmatpush.bf16.msra.mxu1 %v507_v17  ;;  %2295 = vmatmul.msk.bf16.vlgmr.msrb.gmra.mxu2 %vm202_vm0, %v2474_v20 }
  0x8b   :  { %608 = vmatpush.bf16.msra.mxu2 %v508_v18  ;;  %v2988_v23 = vpop.f32.mrf.mxu3  ;;  %2278 = vmatmul.msk.bf16.gmra.mxu0 %vm202_vm0, %v2865_v21 }
  0x8c   :  { %3699 = vst [vmem:[#allocation5_spill] sm:$0xff] %v2988_v23  ;;  %v2996_v27 = vpop.f32.mrf.mxu2 }
  0x8d   :  { %v2998_v29 = vpop.f32.mrf.mxu1 }
  0x8f   :  { %v3026_v42 = vpop.f32.mrf.mxu0 }
  0x93   :  { %v3002_v30 = vpop.f32.mrf.mxu3 }
  0x94   :  { %3700 = vst [vmem:[#allocation6_spill] sm:$0xff] %v3002_v30  ;;  %v3004_v32 = vpop.f32.mrf.mxu2 }
  0x95   :  { %v3009_v37 = vpop.f32.mrf.mxu1 }
  0x97   :  { %v3039_v47 = vpop.f32.mrf.mxu0 }
  0x98   :  { %2297 = vmatmul.msk.bf16.vlgmr.msra.gmra.mxu3 %vm202_vm0, %v2474_v20 }
  0x99   :  { %2294 = vmatmul.msk.bf16.gmra.mxu1 %vm202_vm0, %v2475_v33 }
  0x9a   :  { %2296 = vmatmul.msk.bf16.gmra.mxu2 %vm202_vm0, %v2475_v33 }
  0x9b   :  { %v3014_v38 = vpop.f32.mrf.mxu3  ;;  %2279 = vmatmul.msk.bf16.gmra.mxu0 %vm202_vm0, %v2890_v26 }
  0x9c   :  { %v3018_v13 = vpop.f32.mrf.mxu2 }
  0x9d   :  { %v3020_v40 = vpop.f32.mrf.mxu1 }
  0x9f   :  { %v3051_v51 = vpop.f32.mrf.mxu0 }
  0xa3   :  { %v3024_v41 = vpop.f32.mrf.mxu3 }
  0xa4   :  { %v3028_v43 = vpop.f32.mrf.mxu2 }
  0xa5   :  { %v3030_v44 = vpop.f32.mrf.mxu1 }
  0xa7   :  { %v3061_v55 = vpop.f32.mrf.mxu0 }
  0xa8   :  { %2298 = vmatmul.msk.bf16.gmra.mxu3 %vm202_vm0, %v2475_v33 }
  0xa9   :  { %2299 = vmatmul.msk.bf16.vlgmr.msra.gmra.mxu1 %vm202_vm0, %v2474_v20 }
  0xaa   :  { %2301 = vmatmul.msk.bf16.vlgmr.msra.gmra.mxu2 %vm202_vm0, %v2474_v20 }
  0xab   :  { %v3035_v45 = vpop.f32.mrf.mxu3  ;;  %2280 = vmatmul.msk.bf16.gmra.mxu0 %vm202_vm0, %v2915_v31 }
  0xac   :  { %v3037_v46 = vpop.f32.mrf.mxu2 }
  0xad   :  { %v3041_v21 = vpop.f32.mrf.mxu1 }
  0xaf   :  { %v3073_v59 = vpop.f32.mrf.mxu0 }
  0xb3   :  { %v3045_v48 = vpop.f32.mrf.mxu3 }
  0xb4   :  { %v3047_v49 = vpop.f32.mrf.mxu2 }
  0xb5   :  { %v3049_v50 = vpop.f32.mrf.mxu1 }
  0xb7   :  { %v3085_v63 = vpop.f32.mrf.mxu0 }
  0xb9   :  { %2300 = vmatmul.msk.bf16.gmra.mxu1 %vm202_vm0, %v2475_v33 }
  0xba   :  { %2302 = vmatmul.msk.bf16.gmra.mxu2 %vm202_vm0, %v2475_v33 }
  0xbb   :  { %v3055_v52 = vpop.f32.mrf.mxu3  ;;  %2281 = vmatmul.msk.bf16.gmra.mxu0 %vm202_vm0, %v2934_v34 }
  0xbc   :  { %v3057_v53 = vpop.f32.mrf.mxu2 }
  0xbd   :  { %v3059_v54 = vpop.f32.mrf.mxu1 }
  0xbf   :  { %v3095_v4 = vpop.f32.mrf.mxu0 }
  0xc3   :  { %v3065_v26 = vpop.f32.mrf.mxu3 }
  0xc4   :  { %v3067_v56 = vpop.f32.mrf.mxu2 }
  0xc5   :  { %v3069_v57 = vpop.f32.mrf.mxu1 }
  0xc7   :  { %v3105_v7 = vpop.f32.mrf.mxu0 }
  0xcb   :  { %v3071_v58 = vpop.f32.mrf.mxu3  ;;  %2282 = vmatmul.msk.bf16.gmra.mxu0 %vm202_vm0, %v2947_v35 }
  0xcc   :  { %v3075_v60 = vpop.f32.mrf.mxu2 }
  0xcd   :  { %v3077_v61 = vpop.f32.mrf.mxu1 }
  0xcf   :  { %v3117_v35 = vpop.f32.mrf.mxu0 }
  0xd3   :  { %v3081_v62 = vpop.f32.mrf.mxu3 }
  0xd4   :  { %v3083_v31 = vpop.f32.mrf.mxu2 }
  0xd5   :  { %v3087_v0 = vpop.f32.mrf.mxu1 }
  0xd7   :  { %v3127_v18 = vpop.f32.mrf.mxu0 }
  0xdb   :  { %v3089_v1 = vpop.f32.mrf.mxu3  ;;  %2283 = vmatmul.msk.bf16.gmra.mxu0 %vm202_vm0, %v2960_v36 }
  0xdc   :  { %v3091_v2 = vpop.f32.mrf.mxu2 }
  0xdd   :  { %v3093_v3 = vpop.f32.mrf.mxu1 }
  0xdf   :  { %v3138_v28 = vpop.f32.mrf.mxu0 }
  0xe3   :  { %v3099_v34 = vpop.f32.mrf.mxu3 }
  0xe4   :  { %v3101_v5 = vpop.f32.mrf.mxu2 }
  0xe5   :  { %v3103_v6 = vpop.f32.mrf.mxu1 }
  0xe6   :  { %3701 = vst [vmem:[#allocation7_spill] sm:$0xff] %v3103_v6 }
  0xe7   :  { %v3144_v23 = vpop.f32.mrf.mxu0 }
  0xe8   :  { %3713 = vst [vmem:[#allocation19_spill] sm:$0xff] %v3144_v23 }
  0xeb   :  { %v3107_v8 = vpop.f32.mrf.mxu3  ;;  %2284 = vmatmul.msk.bf16.gmra.mxu0 %vm202_vm0, %v2829_v12 }
  0xec   :  { %v3109_v9 = vpop.f32.mrf.mxu2 }
  0xed   :  { %3702 = vst [vmem:[#allocation8_spill] sm:$0xff] %v3109_v9  ;;  %v3111_v10 = vpop.f32.mrf.mxu1 }
  0xee   :  { %3703 = vst [vmem:[#allocation9_spill] sm:$0xff] %v3111_v10 }
  0xf3   :  { %v3115_v11 = vpop.f32.mrf.mxu3 }
  0xf4   :  { %3704 = vst [vmem:[#allocation10_spill] sm:$0xff] %v3115_v11  ;;  %v3119_v14 = vpop.f32.mrf.mxu2 }
  0xf5   :  { %3705 = vst [vmem:[#allocation11_spill] sm:$0xff] %v3119_v14  ;;  %v3121_v15 = vpop.f32.mrf.mxu1 }
  0xf6   :  { %3706 = vst [vmem:[#allocation12_spill] sm:$0xff] %v3121_v15 }
  0xfb   :  { %v3123_v16 = vpop.f32.mrf.mxu3 }
  0xfc   :  { %3707 = vst [vmem:[#allocation13_spill] sm:$0xff] %v3123_v16  ;;  %v3125_v17 = vpop.f32.mrf.mxu2 }
  0xfd   :  { %3708 = vst [vmem:[#allocation14_spill] sm:$0xff] %v3125_v17  ;;  %v3129_v19 = vpop.f32.mrf.mxu1 }
  0xfe   :  { %3709 = vst [vmem:[#allocation15_spill] sm:$0xff] %v3129_v19 }
 0x103   :  { %v3133_v36 = vpop.f32.mrf.mxu3 }
 0x104   :  { %3710 = vst [vmem:[#allocation16_spill] sm:$0xff] %v3133_v36  ;;  %v3135_v20 = vpop.f32.mrf.mxu2 }
 0x105   :  { %3711 = vst [vmem:[#allocation17_spill] sm:$0xff] %v3135_v20 }
 0x106   :  { %v534_v24 = vpop.f32.mrf.mxu1 }
 0x107   :  { %v535_v25 = vadd.f32 %v534_v24, %v3016_v39 }
 0x109   :  { %v620_v33 = vsub.f32 0.0, %v535_v25 }
 0x10b   :  { %v3140_v16 = vpop.f32.mrf.mxu3  ;;  %v630_v17 = vmul.f32 1.442695, %v620_v33 }
 0x10c   :  { %3712 = vst [vmem:[#allocation18_spill] sm:$0xff] %v3140_v16 }
 0x10d   :  { %v553_v30 = vpop.f32.mrf.mxu2  ;;  %2499 = vpow2.f32 %v630_v17 }
 0x10e   :  { %v554_v14 = vadd.f32 %v553_v30, %v2982_v22  ;;  %v536_v19 = vpop.f32.mrf.mxu1  ;;  %v31_v30 = vld [vmem:[%s3697_s5 + $0x30] sm:$0xff] }
 0x10f   :  { %v537_v15 = vadd.f32 %v536_v19, %v3026_v42  ;;  %705 = vperm.xlu2 %2498, %v31_v30  }
 0x110   :  { %v621_v12 = vsub.f32 0.0, %v554_v14 }
 0x111   :  { %v625_v36 = vsub.f32 0.0, %v537_v15 }
 0x112   :  { %v632_v20 = vmul.f32 1.442695, %v621_v12 }
 0x113   :  { %v640_v9 = vmul.f32 1.442695, %v625_v36  ;;  %v3146_v39 = vpop.f32.mrf.mxu3  ;;  %v2500_v16 = vpop.eup %2499 }
 0x114   :  { %3714 = vst [vmem:[#allocation20_spill] sm:$0xff] %v3146_v39  ;;  %v650_v42 = vadd.f32 1.0, %v2500_v16  ;;  %v3153_v36 = vpop.f32.mrf.mxu0 }
 0x115   :  { %2501 = vpow2.f32 %v640_v9  ;;  %v555_v24 = vpop.f32.mrf.mxu2  ;;  %3715 = vst [vmem:[#allocation21_spill] sm:$0xff] %v3153_v36 }
 0x116   :  { %v556_v25 = vadd.f32 %v555_v24, %v2998_v29  ;;  %v539_v33 = vpop.f32.mrf.mxu1  ;;  %2503 = vpow2.f32 %v632_v20 }
 0x117   :  { %v540_v17 = vadd.f32 %v539_v33, %v3039_v47  ;;  %v32_v47 = vld [vmem:[%s3697_s5 + $0x38] sm:$0xff] }
 0x118   :  { %v626_v22 = vsub.f32 0.0, %v556_v25  ;;  %710 = vperm.xlu2 %2498, %v32_v47  }
 0x11a   :  { %v642_v14 = vmul.f32 1.442695, %v626_v22 }
 0x11b   :  { %v2502_v15 = vpop.eup %2501  ;;  %v572_v19 = vpop.f32.mrf.mxu3 }
 0x11c   :  { %v655_v9 = vadd.f32 1.0, %v2502_v15  ;;  %2505 = vpow2.f32 %v642_v14  ;;  %v573_v29 = vadd.f32 %v572_v19, %v2996_v27  ;;  %v2504_v12 = vpop.eup %2503 }
 0x11d   :  { %v558_v20 = vpop.f32.mrf.mxu2  ;;  %2507 = vrcp.f32 %v650_v42  ;;  %v651_v22 = vadd.f32 1.0, %v2504_v12 }
 0x11e   :  { %v622_v24 = vsub.f32 0.0, %v573_v29  ;;  %v541_v25 = vpop.f32.mrf.mxu1  ;;  %2509 = vtanh.f32 %v540_v17  ;;  %v559_v14 = vadd.f32 %v558_v20, %v3009_v37 }
 0x11f   :  { %v542_v16 = vadd.f32 %v541_v25, %v3051_v51  ;;  %2511 = vrcp.f32 %v655_v9  ;;  %v432_v9 = vpop.f32.mrf.mxu0 }
 0x120   :  { %v634_v30 = vmul.f32 1.442695, %v622_v24 }
 0x121   :  { %2513 = vtanh.f32 %v542_v16 }
 0x122   :  { %v2506_v33 = vpop.eup %2505  ;;  %2515 = vrcp.f32 %v651_v22 }
 0x123   :  { %v656_v27 = vadd.f32 1.0, %v2506_v33  ;;  %v574_v15 = vpop.f32.mrf.mxu3  ;;  %v2508_v42 = vpop.eup %2507  ;;  %2517 = vpow2.f32 %v634_v30 }
 0x124   :  { %v575_v17 = vadd.f32 %v574_v15, %v3004_v32  ;;  %v2510_v19 = vpop.eup %2509  ;;  %2519 = vtanh.f32 %v559_v14  ;;  %v37_v32 = vld [vmem:[%s3697_s5 + $0x60] sm:$0xff] }
 0x125   :  { %v560_v51 = vpop.f32.mrf.mxu2  ;;  %v2512_v29 = vpop.eup %2511  ;;  %2521 = vrcp.f32 %v656_v27  ;;  %v680_v20 = vmul.f32 %v2510_v19, %v2508_v42  ;;  %1369 = vperm.xlu2 %2498, %v37_v32   ;;  %v3170_v27 = vld [vmem:[%s3695_s3 + $0x40] sm:$0xff] }
 0x126   :  { %v627_v12 = vsub.f32 0.0, %v575_v17  ;;  %v561_v24 = vadd.f32 %v560_v51, %v3020_v40  ;;  %v591_v25 = vpop.f32.mrf.mxu1 }
 0x127   :  { %v2514_v16 = vpop.eup %2513  ;;  %v592_v37 = vadd.f32 %v591_v25, %v3014_v38 }
 0x128   :  { %v685_v47 = vmul.f32 %v2514_v16, %v2512_v29  ;;  %v644_v33 = vmul.f32 1.442695, %v627_v12  ;;  %2523 = vtanh.f32 %v561_v24  ;;  %v2516_v30 = vpop.eup %2515 }
 0x129   :  { %v623_v22 = vsub.f32 0.0, %v592_v37  ;;  %v2518_v15 = vpop.eup %2517 }
 0x12a   :  { %2525 = vpow2.f32 %v644_v33  ;;  %v690_v14 = vpack.c.bf16 %v685_v47, %v680_v20  ;;  %v2520_v38 = vpop.eup %2519  ;;  %v652_v29 = vadd.f32 1.0, %v2518_v15  ;;  %v434_v47 = vpop.f32.mrf.mxu0 }
 0x12b   :  { %v577_v40 = vpop.f32.mrf.mxu3  ;;  %v2522_v42 = vpop.eup %2521  ;;  %v636_v17 = vmul.f32 1.442695, %v623_v22  ;;  %v681_v25 = vmul.f32 %v2520_v38, %v2516_v30 }
 0x12c   :  { %736 = vmatpush.bf16.msrb.mxu3 %v690_v14  ;;  %v578_v37 = vadd.f32 %v577_v40, %v3018_v13 }
 0x12d   :  { %v610_v19 = vpop.f32.mrf.mxu2  ;;  %2527 = vpow2.f32 %v636_v17 }
 0x12e   :  { %v2524_v51 = vpop.eup %2523  ;;  %v611_v12 = vadd.f32 %v610_v19, %v432_v9  ;;  %v593_v24 = vpop.f32.mrf.mxu1  ;;  %v44_v9 = vld [vmem:[%s3697_s5 + $0x98] sm:$0xff]  ;;  %2529 = vrcp.f32 %v652_v29 }
 0x12f   :  { %v686_v16 = vmul.f32 %v2524_v51, %v2522_v42  ;;  %v594_v20 = vadd.f32 %v593_v24, %v3024_v41  ;;  %2311 = vmatmul.msk.bf16.vlgmr.msrb.gmra.mxu3 %vm202_vm0, %v3170_v27  ;;  %1734 = vperm.xlu2 %2498, %v44_v9   ;;  %2531 = vtanh.f32 %v578_v37 }
 0x130   :  { %v2526_v33 = vpop.eup %2525  ;;  %v624_v32 = vsub.f32 0.0, %v611_v12 }
 0x131   :  { %v657_v14 = vadd.f32 1.0, %v2526_v33  ;;  %v628_v22 = vsub.f32 0.0, %v594_v20  ;;  %v691_v39 = vpack.c.bf16 %v686_v16, %v681_v25  ;;  %v2483_v20 = vld [vmem:[%s3695_s3 + $0x48] sm:$0xff] }
 0x132   :  { %v638_v30 = vmul.f32 1.442695, %v624_v32  ;;  %v437_v12 = vpop.f32.mrf.mxu0 }
 0x133   :  { %v646_v13 = vmul.f32 1.442695, %v628_v22  ;;  %v579_v41 = vpop.f32.mrf.mxu3  ;;  %753 = vmatpush.bf16.msrb.mxu1 %v691_v39  ;;  %2533 = vrcp.f32 %v657_v14  ;;  %v2528_v17 = vpop.eup %2527  ;;  %v35_v39 = vld [vmem:[%s3697_s5 + $0x50] sm:$0xff] }
 0x134   :  { %v580_v15 = vadd.f32 %v579_v41, %v3028_v43  ;;  %v2530_v19 = vpop.eup %2529  ;;  %v653_v43 = vadd.f32 1.0, %v2528_v17 }
 0x135   :  { %2535 = vpow2.f32 %v646_v13  ;;  %v612_v40 = vpop.f32.mrf.mxu2  ;;  %v2532_v29 = vpop.eup %2531 }
 0x136   :  { %2537 = vpow2.f32 %v638_v30  ;;  %v613_v38 = vadd.f32 %v612_v40, %v434_v47  ;;  %2313 = vmatmul.msk.bf16.vlgmr.msrb.gmra.mxu1 %vm202_vm0, %v3170_v27  ;;  %v596_v42 = vpop.f32.mrf.mxu1  ;;  %v682_v22 = vmul.f32 %v2532_v29, %v2530_v19  ;;  %v50_v40 = vld [vmem:[%s3697_s5 + $0xc8] sm:$0xff] }
 0x137   :  { %2539 = vtanh.f32 %v580_v15  ;;  %1027 = vperm.xlu2 %2498, %v35_v39   ;;  %v597_v37 = vadd.f32 %v596_v42, %v3035_v45 }
 0x138   :  { %v629_v51 = vsub.f32 0.0, %v613_v38 }
 0x139   :  { %v2534_v24 = vpop.eup %2533 }
 0x13a   :  { %v648_v25 = vmul.f32 1.442695, %v629_v51  ;;  %v439_v17 = vpop.f32.mrf.mxu0 }
 0x13b   :  { %v2536_v16 = vpop.eup %2535 }
 0x13c   :  { %v2538_v47 = vpop.eup %2537  ;;  %v658_v33 = vadd.f32 1.0, %v2536_v16  ;;  %2541 = vpow2.f32 %v648_v25 }
 0x13d   :  { %v2540_v32 = vpop.eup %2539  ;;  %v615_v14 = vpop.f32.mrf.mxu2  ;;  %2543 = vrcp.f32 %v653_v43  ;;  %v654_v13 = vadd.f32 1.0, %v2538_v47 }
 0x13e   :  { %v687_v9 = vmul.f32 %v2540_v32, %v2534_v24  ;;  %v598_v30 = vpop.f32.mrf.mxu1  ;;  %2545 = vtanh.f32 %v597_v37  ;;  %v616_v45 = vadd.f32 %v615_v14, %v437_v12  ;;  %v45_v24 = vld [vmem:[%s3697_s5 + $0xa0] sm:$0xff] }
 0x13f   :  { %v599_v41 = vadd.f32 %v598_v30, %v3045_v48  ;;  %2312 = vmatmul.msk.bf16.gmra.mxu3 %vm202_vm0, %v2483_v20  ;;  %2547 = vrcp.f32 %v658_v33  ;;  %1897 = vperm.xlu2 %2498, %v50_v40  }
 0x140   :  { %v692_v15 = vpack.c.bf16 %v687_v9, %v682_v22 }
 0x141   :  { %2549 = vtanh.f32 %v599_v41 }
 0x142   :  { %v2542_v38 = vpop.eup %2541  ;;  %770 = vmatpush.bf16.msrb.mxu2 %v692_v15  ;;  %2551 = vrcp.f32 %v654_v13 }
 0x143   :  { %v659_v42 = vadd.f32 1.0, %v2542_v38  ;;  %v2544_v19 = vpop.eup %2543  ;;  %2553 = vtanh.f32 %v616_v45 }
 0x144   :  { %v2546_v51 = vpop.eup %2545 }
 0x145   :  { %2315 = vmatmul.msk.bf16.vlgmr.msrb.gmra.mxu2 %vm202_vm0, %v3170_v27  ;;  %v617_v48 = vpop.f32.mrf.mxu2  ;;  %v2548_v29 = vpop.eup %2547  ;;  %2555 = vrcp.f32 %v659_v42  ;;  %v683_v43 = vmul.f32 %v2546_v51, %v2544_v19 }
 0x146   :  { %v618_v12 = vadd.f32 %v617_v48, %v439_v17  ;;  %2314 = vmatmul.msk.bf16.gmra.mxu1 %vm202_vm0, %v2483_v20 }
 0x147   :  { %v2550_v39 = vpop.eup %2549  ;;  %1872 = vperm.xlu2 %2498, %v45_v24   ;;  %v2476_v24 = vld [vmem:[%s3695_s3 + $0x10] sm:$0xff] }
 0x148   :  { %v688_v25 = vmul.f32 %v2550_v39, %v2548_v29  ;;  %2557 = vtanh.f32 %v618_v12  ;;  %v2552_v16 = vpop.eup %2551 }
 0x149   :  { %v2554_v37 = vpop.eup %2553 }
 0x14a   :  { %v693_v47 = vpack.c.bf16 %v688_v25, %v683_v43  ;;  %v684_v32 = vmul.f32 %v2554_v37, %v2552_v16 }
 0x14b   :  { %v2556_v33 = vpop.eup %2555 }
 0x14c   :  { %787 = vmatpush.bf16.msra.mxu3 %v693_v47 }
 0x14e   :  { %v2558_v14 = vpop.eup %2557 }
 0x14f   :  { %v689_v22 = vmul.f32 %v2558_v14, %v2556_v33  ;;  %2317 = vmatmul.msk.bf16.vlgmr.msra.gmra.mxu3 %vm202_vm0, %v3170_v27 }
 0x151   :  { %v694_v9 = vpack.c.bf16 %v689_v22, %v684_v32  ;;  %v2477_v32 = vld [vmem:[%s3695_s3 + $0x18] sm:$0xff] }
 0x153   :  { %804 = vmatpush.bf16.msra.mxu1 %v694_v9 }
 0x155   :  { %2316 = vmatmul.msk.bf16.gmra.mxu2 %vm202_vm0, %v2483_v20 }
 0x156   :  { %2319 = vmatmul.msk.bf16.vlgmr.msra.gmra.mxu1 %vm202_vm0, %v3170_v27 }
 0x15f   :  { %2318 = vmatmul.msk.bf16.gmra.mxu3 %vm202_vm0, %v2483_v20 }
 0x166   :  { %2320 = vmatmul.msk.bf16.gmra.mxu1 %vm202_vm0, %v2483_v20 }
 0x169   :  { %v706_v15 = vpop.permute.xlu2 %705 }
 0x172   :  { %v711_v17 = vpop.permute.xlu2 %710 }
 0x1b2   :  { %v738_v30 = vpop.f32.mrf.mxu3 }
 0x1b3   :  { %v755_v13 = vpop.f32.mrf.mxu1 }
 0x1ba   :  { %v739_v41 = vpop.f32.mrf.mxu3 }
 0x1bb   :  { %v756_v45 = vpop.f32.mrf.mxu1 }
 0x1c2   :  { %v741_v40 = vpop.f32.mrf.mxu3 }
 0x1c3   :  { %v758_v38 = vpop.f32.mrf.mxu1  ;;  %v3207_v51 = vadd.f32 %v741_v40, %v706_v15 }
 0x1c4   :  { %v3211_v27 = vadd.f32 %v758_v38, %v706_v15 }
 0x1c8   :  { %v772_v42 = vpop.f32.mrf.mxu2 }
 0x1ca   :  { %v743_v19 = vpop.f32.mrf.mxu3 }
 0x1cb   :  { %v3209_v48 = vadd.f32 %v743_v19, %v711_v17  ;;  %v760_v29 = vpop.f32.mrf.mxu1 }
 0x1cc   :  { %v3213_v12 = vadd.f32 %v760_v29, %v711_v17 }
 0x1cd   :  { %v824_v20 = vpack.c.bf16 %v3209_v48, %v3207_v51 }
 0x1ce   :  { %v825_v39 = vpack.c.bf16 %v3213_v12, %v3211_v27 }
 0x1cf   :  { %852 = vmatpush.bf16.msra.mxu2 %v824_v20 }
 0x1d0   :  { %v773_v43 = vpop.f32.mrf.mxu2  ;;  %871 = vmatpush.bf16.msrb.mxu3 %v825_v39  ;;  %v3246_v39 = vpop.f32.mrf.mxu0 }
 0x1d2   :  { %v789_v25 = vpop.f32.mrf.mxu3  ;;  %2329 = vmatmul.msk.bf16.vlgmr.msra.gmra.mxu2 %vm202_vm0, %v2476_v24 }
 0x1d3   :  { %v806_v16 = vpop.f32.mrf.mxu1  ;;  %2331 = vmatmul.msk.bf16.vlgmr.msrb.gmra.mxu3 %vm202_vm0, %v2476_v24 }
 0x1d8   :  { %v775_v37 = vpop.f32.mrf.mxu2  ;;  %v3252_v25 = vpop.f32.mrf.mxu0 }
 0x1d9   :  { %v3227_v22 = vadd.f32 %v775_v37, %v706_v15 }
 0x1da   :  { %v790_v47 = vpop.f32.mrf.mxu3 }
 0x1db   :  { %v807_v33 = vpop.f32.mrf.mxu1 }
 0x1e0   :  { %v777_v14 = vpop.f32.mrf.mxu2 }
 0x1e1   :  { %v3229_v9 = vadd.f32 %v777_v14, %v711_v17 }
 0x1e2   :  { %v792_v30 = vpop.f32.mrf.mxu3  ;;  %2330 = vmatmul.msk.bf16.gmra.mxu2 %vm202_vm0, %v2477_v32 }
 0x1e3   :  { %v826_v13 = vpack.c.bf16 %v3229_v9, %v3227_v22  ;;  %v809_v41 = vpop.f32.mrf.mxu1  ;;  %2332 = vmatmul.msk.bf16.gmra.mxu3 %vm202_vm0, %v2477_v32  ;;  %v3236_v40 = vadd.f32 %v792_v30, %v706_v15 }
 0x1e4   :  { %v3240_v19 = vadd.f32 %v809_v41, %v706_v15  ;;  %v3255_v15 = vpop.f32.mrf.mxu0 }
 0x1e5   :  { %890 = vmatpush.bf16.msra.mxu0 %v826_v13 }
 0x1e8   :  { %2333 = vmatmul.msk.bf16.vlgmr.msra.gmra.mxu0 %vm202_vm0, %v2476_v24 }
 0x1ea   :  { %v794_v45 = vpop.f32.mrf.mxu3 }
 0x1eb   :  { %v3238_v38 = vadd.f32 %v794_v45, %v711_v17  ;;  %v811_v42 = vpop.f32.mrf.mxu1 }
 0x1ec   :  { %v3242_v29 = vadd.f32 %v811_v42, %v711_v17  ;;  %v3259_v17 = vpop.f32.mrf.mxu0 }
 0x1ed   :  { %v827_v20 = vpack.c.bf16 %v3238_v38, %v3236_v40 }
 0x1ee   :  { %v828_v43 = vpack.c.bf16 %v3242_v29, %v3240_v19 }
 0x1ef   :  { %909 = vmatpush.bf16.msrb.mxu1 %v827_v20 }
 0x1f0   :  { %928 = vmatpush.bf16.msrb.mxu2 %v828_v43 }
 0x1f2   :  { %2335 = vmatmul.msk.bf16.vlgmr.msrb.gmra.mxu1 %vm202_vm0, %v2476_v24 }
 0x1f3   :  { %2337 = vmatmul.msk.bf16.vlgmr.msrb.gmra.mxu2 %vm202_vm0, %v2476_v24 }
 0x1f4   :  { %v3261_v16 = vpop.f32.mrf.mxu0 }
 0x1f8   :  { %2334 = vmatmul.msk.bf16.gmra.mxu0 %vm202_vm0, %v2477_v32 }
 0x1fc   :  { %v3263_v37 = vpop.f32.mrf.mxu0 }
 0x202   :  { %2336 = vmatmul.msk.bf16.gmra.mxu1 %vm202_vm0, %v2477_v32 }
 0x203   :  { %2338 = vmatmul.msk.bf16.gmra.mxu2 %vm202_vm0, %v2477_v32 }
 0x204   :  { %v3265_v47 = vpop.f32.mrf.mxu0 }
 0x205   :  { %3716 = vst [vmem:[#allocation22_spill] sm:$0xff] %v3265_v47 }
 0x20c   :  { %v3267_v33 = vpop.f32.mrf.mxu0 }
 0x20d   :  { %3717 = vst [vmem:[#allocation23_spill] sm:$0xff] %v3267_v33 }
 0x214   :  { %v3269_v24 = vpop.f32.mrf.mxu0 }
 0x215   :  { %3718 = vst [vmem:[#allocation24_spill] sm:$0xff] %v3269_v24 }
 0x21c   :  { %v3271_v14 = vpop.f32.mrf.mxu0 }
 0x21d   :  { %3719 = vst [vmem:[#allocation25_spill] sm:$0xff] %v3271_v14 }
 0x224   :  { %v3273_v30 = vpop.f32.mrf.mxu0 }
 0x225   :  { %3720 = vst [vmem:[#allocation26_spill] sm:$0xff] %v3273_v30 }
 0x22c   :  { %v3277_v36 = vpop.f32.mrf.mxu0 }
 0x22d   :  { %3721 = vst [vmem:[#allocation27_spill] sm:$0xff] %v3277_v36 }
 0x255   :  { %v854_v13 = vpop.f32.mrf.mxu2 }
 0x256   :  { %v855_v41 = vadd.f32 %v854_v13, %v3061_v55  ;;  %v873_v32 = vpop.f32.mrf.mxu3 }
 0x257   :  { %v874_v45 = vadd.f32 %v873_v32, %v3030_v44 }
 0x258   :  { %v940_v42 = vsub.f32 0.0, %v855_v41 }
 0x259   :  { %v941_v20 = vsub.f32 0.0, %v874_v45 }
 0x25a   :  { %v950_v43 = vmul.f32 1.442695, %v940_v42 }
 0x25b   :  { %v952_v10 = vmul.f32 1.442695, %v941_v20 }
 0x25c   :  { %2559 = vpow2.f32 %v950_v43 }
 0x25d   :  { %v856_v6 = vpop.f32.mrf.mxu2  ;;  %2561 = vpow2.f32 %v952_v10 }
 0x25e   :  { %v857_v24 = vadd.f32 %v856_v6, %v3073_v59  ;;  %v875_v14 = vpop.f32.mrf.mxu3 }
 0x25f   :  { %v876_v30 = vadd.f32 %v875_v14, %v3041_v21 }
 0x260   :  { %v945_v23 = vsub.f32 0.0, %v857_v24 }
 0x261   :  { %v946_v33 = vsub.f32 0.0, %v876_v30 }
 0x262   :  { %v960_v55 = vmul.f32 1.442695, %v945_v23  ;;  %v2560_v13 = vpop.eup %2559 }
 0x263   :  { %v962_v11 = vmul.f32 1.442695, %v946_v33  ;;  %v2562_v44 = vpop.eup %2561  ;;  %v970_v45 = vadd.f32 1.0, %v2560_v13 }
 0x264   :  { %2563 = vpow2.f32 %v960_v55  ;;  %v971_v43 = vadd.f32 1.0, %v2562_v44 }
 0x265   :  { %v892_v41 = vpop.f32.mrf.mxu0  ;;  %v859_v32 = vpop.f32.mrf.mxu2  ;;  %2565 = vpow2.f32 %v962_v11 }
 0x266   :  { %v893_v42 = vadd.f32 %v892_v41, %v3037_v46  ;;  %v878_v20 = vpop.f32.mrf.mxu3  ;;  %v860_v59 = vadd.f32 %v859_v32, %v3085_v63  ;;  %2567 = vrcp.f32 %v970_v45 }
 0x267   :  { %v879_v21 = vadd.f32 %v878_v20, %v3049_v50  ;;  %2569 = vrcp.f32 %v971_v43 }
 0x268   :  { %v942_v10 = vsub.f32 0.0, %v893_v42  ;;  %2571 = vtanh.f32 %v860_v59 }
 0x269   :  { %2573 = vtanh.f32 %v879_v21 }
 0x26a   :  { %v2564_v6 = vpop.eup %2563  ;;  %v954_v23 = vmul.f32 1.442695, %v942_v10 }
 0x26b   :  { %v975_v33 = vadd.f32 1.0, %v2564_v6  ;;  %v2566_v24 = vpop.eup %2565 }
 0x26c   :  { %v976_v55 = vadd.f32 1.0, %v2566_v24  ;;  %2575 = vpow2.f32 %v954_v23  ;;  %v2568_v44 = vpop.eup %2567 }
 0x26d   :  { %v894_v14 = vpop.f32.mrf.mxu0  ;;  %v861_v30 = vpop.f32.mrf.mxu2  ;;  %2577 = vrcp.f32 %v975_v33 }
 0x26e   :  { %v895_v46 = vadd.f32 %v894_v14, %v3047_v49  ;;  %v862_v11 = vadd.f32 %v861_v30, %v3095_v4  ;;  %v880_v13 = vpop.f32.mrf.mxu3  ;;  %2579 = vrcp.f32 %v976_v55  ;;  %v2570_v45 = vpop.eup %2569 }
 0x26f   :  { %v881_v50 = vadd.f32 %v880_v13, %v3059_v54  ;;  %v911_v63 = vpop.f32.mrf.mxu1  ;;  %v2572_v42 = vpop.eup %2571 }
 0x270   :  { %v947_v41 = vsub.f32 0.0, %v895_v46  ;;  %v912_v32 = vadd.f32 %v911_v63, %v3055_v52  ;;  %2581 = vtanh.f32 %v862_v11  ;;  %v2574_v43 = vpop.eup %2573  ;;  %v1000_v30 = vmul.f32 %v2572_v42, %v2568_v44 }
 0x271   :  { %2583 = vtanh.f32 %v881_v50  ;;  %v1001_v11 = vmul.f32 %v2574_v43, %v2570_v45 }
 0x272   :  { %v964_v20 = vmul.f32 1.442695, %v947_v41  ;;  %v943_v10 = vsub.f32 0.0, %v912_v32  ;;  %v2576_v49 = vpop.eup %2575 }
 0x273   :  { %v2578_v4 = vpop.eup %2577  ;;  %v972_v52 = vadd.f32 1.0, %v2576_v49 }
 0x274   :  { %2585 = vpow2.f32 %v964_v20  ;;  %v2580_v21 = vpop.eup %2579  ;;  %v956_v23 = vmul.f32 1.442695, %v943_v10 }
 0x275   :  { %v897_v59 = vpop.f32.mrf.mxu0 }
 0x276   :  { %v930_v6 = vpop.f32.mrf.mxu2  ;;  %v2582_v54 = vpop.eup %2581  ;;  %v898_v50 = vadd.f32 %v897_v59, %v3057_v53  ;;  %2587 = vpow2.f32 %v956_v23 }
 0x277   :  { %v931_v33 = vadd.f32 %v930_v6, %v3246_v39  ;;  %v913_v24 = vpop.f32.mrf.mxu1  ;;  %v2584_v14 = vpop.eup %2583  ;;  %v1005_v55 = vmul.f32 %v2582_v54, %v2578_v4  ;;  %v3294_v39 = vld [vmem:[%s3695_s3 + $0x50] sm:$0xff]  ;;  %2589 = vrcp.f32 %v972_v52 }
 0x278   :  { %v914_v46 = vadd.f32 %v913_v24, %v3065_v26  ;;  %v1006_v13 = vmul.f32 %v2584_v14, %v2580_v21  ;;  %2591 = vtanh.f32 %v898_v50 }
 0x279   :  { %v944_v63 = vsub.f32 0.0, %v931_v33  ;;  %v1010_v20 = vpack.c.bf16 %v1005_v55, %v1000_v30 }
 0x27a   :  { %v2586_v41 = vpop.eup %2585  ;;  %v948_v32 = vsub.f32 0.0, %v914_v46  ;;  %v1011_v47 = vpack.c.bf16 %v1006_v13, %v1001_v11 }
 0x27b   :  { %v977_v36 = vadd.f32 1.0, %v2586_v41  ;;  %v958_v10 = vmul.f32 1.442695, %v944_v63  ;;  %1058 = vmatpush.bf16.msra.mxu3 %v1010_v20 }
 0x27c   :  { %v966_v44 = vmul.f32 1.442695, %v948_v32  ;;  %1077 = vmatpush.bf16.msrb.mxu0 %v1011_v47  ;;  %v2588_v49 = vpop.eup %2587 }
 0x27d   :  { %v899_v26 = vpop.f32.mrf.mxu0  ;;  %2593 = vrcp.f32 %v977_v36  ;;  %v2590_v59 = vpop.eup %2589 }
 0x27e   :  { %v900_v53 = vadd.f32 %v899_v26, %v3067_v56  ;;  %v932_v45 = vpop.f32.mrf.mxu2  ;;  %2595 = vpow2.f32 %v958_v10  ;;  %2347 = vmatmul.msk.bf16.vlgmr.msra.gmra.mxu3 %vm202_vm0, %v3294_v39  ;;  %v2592_v47 = vpop.eup %2591  ;;  %v973_v56 = vadd.f32 1.0, %v2588_v49 }
 0x27f   :  { %v933_v42 = vadd.f32 %v932_v45, %v3252_v25  ;;  %v916_v43 = vpop.f32.mrf.mxu1  ;;  %2597 = vpow2.f32 %v966_v44  ;;  %2349 = vmatmul.msk.bf16.vlgmr.msrb.gmra.mxu0 %vm202_vm0, %v3294_v39  ;;  %v1002_v52 = vmul.f32 %v2592_v47, %v2590_v59 }
 0x280   :  { %2599 = vtanh.f32 %v900_v53  ;;  %v917_v25 = vadd.f32 %v916_v43, %v3071_v58  ;;  %v2485_v58 = vld [vmem:[%s3695_s3 + $0x58] sm:$0xff] }
 0x281   :  { %v949_v4 = vsub.f32 0.0, %v933_v42 }
 0x283   :  { %v968_v36 = vmul.f32 1.442695, %v949_v4  ;;  %v2594_v21 = vpop.eup %2593 }
 0x284   :  { %v2596_v6 = vpop.eup %2595 }
 0x285   :  { %2601 = vpow2.f32 %v968_v36  ;;  %v2598_v54 = vpop.eup %2597  ;;  %v974_v46 = vadd.f32 1.0, %v2596_v6  ;;  %v1018_v36 = vpop.permute.xlu0 %1017 }
 0x286   :  { %v935_v23 = vpop.f32.mrf.mxu2  ;;  %v2600_v33 = vpop.eup %2599  ;;  %v978_v24 = vadd.f32 1.0, %v2598_v54  ;;  %2603 = vrcp.f32 %v973_v56 }
 0x287   :  { %v918_v14 = vpop.f32.mrf.mxu1  ;;  %v1007_v30 = vmul.f32 %v2600_v33, %v2594_v21  ;;  %2605 = vtanh.f32 %v917_v25  ;;  %v936_v50 = vadd.f32 %v935_v23, %v3255_v15  ;;  %v1023_v6 = vpop.permute.xlu1 %1022 }
 0x288   :  { %v919_v55 = vadd.f32 %v918_v14, %v3081_v62  ;;  %2607 = vrcp.f32 %v978_v24 }
 0x289   :  { %v1012_v11 = vpack.c.bf16 %v1007_v30, %v1002_v52 }
 0x28a   :  { %2609 = vtanh.f32 %v919_v55 }
 0x28b   :  { %v2602_v13 = vpop.eup %2601  ;;  %1096 = vmatpush.bf16.msra.mxu1 %v1012_v11  ;;  %2611 = vrcp.f32 %v974_v46 }
 0x28c   :  { %v979_v63 = vadd.f32 1.0, %v2602_v13  ;;  %v2604_v41 = vpop.eup %2603  ;;  %2613 = vtanh.f32 %v936_v50 }
 0x28d   :  { %v2606_v20 = vpop.eup %2605 }
 0x28e   :  { %v937_v32 = vpop.f32.mrf.mxu2  ;;  %2351 = vmatmul.msk.bf16.vlgmr.msra.gmra.mxu1 %vm202_vm0, %v3294_v39  ;;  %2348 = vmatmul.msk.bf16.gmra.mxu3 %vm202_vm0, %v2485_v58  ;;  %v2608_v15 = vpop.eup %2607  ;;  %2615 = vrcp.f32 %v979_v63  ;;  %v1003_v44 = vmul.f32 %v2606_v20, %v2604_v41 }
 0x28f   :  { %v938_v62 = vadd.f32 %v937_v32, %v3259_v17  ;;  %2350 = vmatmul.msk.bf16.gmra.mxu0 %vm202_vm0, %v2485_v58 }
 0x290   :  { %v2610_v10 = vpop.eup %2609 }
 0x291   :  { %2617 = vtanh.f32 %v938_v62  ;;  %v1008_v26 = vmul.f32 %v2610_v10, %v2608_v15  ;;  %v2612_v53 = vpop.eup %2611 }
 0x292   :  { %v2614_v42 = vpop.eup %2613 }
 0x293   :  { %v1013_v45 = vpack.c.bf16 %v1008_v26, %v1003_v44  ;;  %v1004_v4 = vmul.f32 %v2614_v42, %v2612_v53 }
 0x294   :  { %v2616_v43 = vpop.eup %2615 }
 0x295   :  { %1115 = vmatpush.bf16.msra.mxu2 %v1013_v45 }
 0x297   :  { %v2618_v49 = vpop.eup %2617 }
 0x298   :  { %v1009_v59 = vmul.f32 %v2618_v49, %v2616_v43  ;;  %2353 = vmatmul.msk.bf16.vlgmr.msra.gmra.mxu2 %vm202_vm0, %v3294_v39 }
 0x29a   :  { %v1014_v17 = vpack.c.bf16 %v1009_v59, %v1004_v4 }
 0x29c   :  { %1134 = vmatpush.bf16.msrb.mxu3 %v1014_v17 }
 0x29e   :  { %2352 = vmatmul.msk.bf16.gmra.mxu1 %vm202_vm0, %v2485_v58 }
 0x29f   :  { %2355 = vmatmul.msk.bf16.vlgmr.msrb.gmra.mxu3 %vm202_vm0, %v3294_v39 }
 0x2a8   :  { %2354 = vmatmul.msk.bf16.gmra.mxu2 %vm202_vm0, %v2485_v58 }
 0x2af   :  { %2356 = vmatmul.msk.bf16.gmra.mxu3 %vm202_vm0, %v2485_v58 }
 0x2fc   :  { %v1079_v47 = vpop.f32.mrf.mxu0 }
 0x2fd   :  { %v1080_v21 = vadd.f32 %v1079_v47, %v1018_v36 }
 0x2ff   :  { %v1147_v54 = vadd.f32 %v1080_v21, %v3211_v27  ;;  %v2478_v27 = vld [vmem:[%s3695_s3 + $0x20] sm:$0xff] }
 0x301   :  { %v1060_v56 = vpop.f32.mrf.mxu3  ;;  %v3322_v14 = vmul.f32 0.70710677, %v1147_v54 }
 0x302   :  { %v1061_v33 = vadd.f32 %v1060_v56, %v1018_v36 }
 0x304   :  { %v1081_v25 = vpop.f32.mrf.mxu0  ;;  %v1146_v30 = vadd.f32 %v1061_v33, %v3207_v51 }
 0x305   :  { %v1082_v23 = vadd.f32 %v1081_v25, %v1023_v6 }
 0x307   :  { %v1152_v24 = vadd.f32 %v1082_v23, %v3213_v12  ;;  %v3333_v12 = vmul.f32 0.70710677, %v1146_v30 }
 0x309   :  { %v3324_v52 = vmul.f32 0.70710677, %v1152_v24  ;;  %v1062_v39 = vpop.f32.mrf.mxu3 }
 0x30a   :  { %v1063_v55 = vadd.f32 %v1062_v39, %v1023_v6 }
 0x30b   :  { %v1177_v46 = vpack.c.bf16 %v3324_v52, %v3322_v14  ;;  %v1098_v11 = vpop.f32.mrf.mxu1 }
 0x30c   :  { %v1151_v13 = vadd.f32 %v1063_v55, %v3209_v48  ;;  %v1099_v51 = vadd.f32 %v1098_v11, %v1018_v36 }
 0x30d   :  { %1223 = vmatpush.bf16.msrb.mxu1 %v1177_v46 }
 0x30e   :  { %v3335_v50 = vmul.f32 0.70710677, %v1151_v13  ;;  %v1148_v48 = vadd.f32 %v1099_v51, %v3227_v22  ;;  %v2479_v22 = vld [vmem:[%s3695_s3 + $0x28] sm:$0xff] }
 0x310   :  { %v1176_v58 = vpack.c.bf16 %v3335_v50, %v3333_v12  ;;  %2367 = vmatmul.msk.bf16.vlgmr.msrb.gmra.mxu1 %vm202_vm0, %v2478_v27  ;;  %v3345_v62 = vmul.f32 0.70710677, %v1148_v48 }
 0x311   :  { %v3340_v63 = vpop.f32.mrf.mxu3 }
 0x312   :  { %1204 = vmatpush.bf16.msra.mxu0 %v1176_v58 }
 0x313   :  { %v1100_v41 = vpop.f32.mrf.mxu1 }
 0x314   :  { %v1101_v32 = vadd.f32 %v1100_v41, %v1023_v6 }
 0x315   :  { %2365 = vmatmul.msk.bf16.vlgmr.msra.gmra.mxu0 %vm202_vm0, %v2478_v27 }
 0x316   :  { %v1153_v20 = vadd.f32 %v1101_v32, %v3229_v9 }
 0x318   :  { %v3347_v15 = vmul.f32 0.70710677, %v1153_v20 }
 0x319   :  { %v3349_v10 = vpop.f32.mrf.mxu3 }
 0x31a   :  { %v1178_v44 = vpack.c.bf16 %v3347_v15, %v3345_v62 }
 0x31b   :  { %v1117_v26 = vpop.f32.mrf.mxu2 }
 0x31c   :  { %1242 = vmatpush.bf16.msrb.mxu2 %v1178_v44  ;;  %v1118_v53 = vadd.f32 %v1117_v26, %v1018_v36 }
 0x31e   :  { %v1149_v42 = vadd.f32 %v1118_v53, %v3236_v40 }
 0x31f   :  { %2369 = vmatmul.msk.bf16.vlgmr.msrb.gmra.mxu2 %vm202_vm0, %v2478_v27 }
 0x320   :  { %2368 = vmatmul.msk.bf16.gmra.mxu1 %vm202_vm0, %v2479_v22  ;;  %v3361_v59 = vmul.f32 0.70710677, %v1149_v42 }
 0x322   :  { %v1136_v9 = vpop.f32.mrf.mxu3 }
 0x323   :  { %v1119_v45 = vpop.f32.mrf.mxu2  ;;  %v1137_v49 = vadd.f32 %v1136_v9, %v1018_v36 }
 0x324   :  { %v1120_v43 = vadd.f32 %v1119_v45, %v1023_v6 }
 0x325   :  { %2366 = vmatmul.msk.bf16.gmra.mxu0 %vm202_vm0, %v2479_v22  ;;  %v1150_v21 = vadd.f32 %v1137_v49, %v3240_v19  ;;  %v3380_v19 = vpop.f32.mrf.mxu1 }
 0x326   :  { %v1154_v4 = vadd.f32 %v1120_v43, %v3238_v38 }
 0x327   :  { %v3369_v40 = vmul.f32 0.70710677, %v1150_v21 }
 0x328   :  { %v3363_v17 = vmul.f32 0.70710677, %v1154_v4 }
 0x32a   :  { %v1138_v47 = vpop.f32.mrf.mxu3  ;;  %v1179_v56 = vpack.c.bf16 %v3363_v17, %v3361_v59 }
 0x32b   :  { %v1139_v25 = vadd.f32 %v1138_v47, %v1023_v6  ;;  %v3389_v39 = vpop.f32.mrf.mxu2 }
 0x32c   :  { %1261 = vmatpush.bf16.msra.mxu3 %v1179_v56 }
 0x32d   :  { %v1155_v54 = vadd.f32 %v1139_v25, %v3242_v29  ;;  %v3382_v29 = vpop.f32.mrf.mxu0  ;;  %v3384_v36 = vpop.f32.mrf.mxu1 }
 0x32f   :  { %v3371_v23 = vmul.f32 0.70710677, %v1155_v54  ;;  %2370 = vmatmul.msk.bf16.gmra.mxu2 %vm202_vm0, %v2479_v22  ;;  %2371 = vmatmul.msk.bf16.vlgmr.msra.gmra.mxu3 %vm202_vm0, %v2478_v27 }
 0x331   :  { %v1180_v38 = vpack.c.bf16 %v3371_v23, %v3369_v40 }
 0x333   :  { %1280 = vmatpush.bf16.msrb.mxu0 %v1180_v38  ;;  %v3393_v48 = vpop.f32.mrf.mxu2 }
 0x335   :  { %v3386_v6 = vpop.f32.mrf.mxu0 }
 0x336   :  { %2373 = vmatmul.msk.bf16.vlgmr.msrb.gmra.mxu0 %vm202_vm0, %v2478_v27 }
 0x33f   :  { %2372 = vmatmul.msk.bf16.gmra.mxu3 %vm202_vm0, %v2479_v22 }
 0x346   :  { %2374 = vmatmul.msk.bf16.gmra.mxu0 %vm202_vm0, %v2479_v22 }
 0x38d   :  { %v1225_v33 = vpop.f32.mrf.mxu1 }
 0x38e   :  { %v1226_v24 = vadd.f32 %v1225_v33, %v3069_v57 }
 0x390   :  { %v1293_v30 = vsub.f32 0.0, %v1226_v24 }
 0x392   :  { %v1206_v55 = vpop.f32.mrf.mxu0  ;;  %v1304_v11 = vmul.f32 1.442695, %v1293_v30 }
 0x393   :  { %v1207_v46 = vadd.f32 %v1206_v55, %v3105_v7  ;;  %v3396_v7 = vpop.f32.mrf.mxu3 }
 0x394   :  { %2619 = vpow2.f32 %v1304_v11 }
 0x395   :  { %v1292_v13 = vsub.f32 0.0, %v1207_v46  ;;  %v1227_v27 = vpop.f32.mrf.mxu1 }
 0x396   :  { %v1228_v58 = vadd.f32 %v1227_v27, %v3077_v61 }
 0x397   :  { %v1302_v51 = vmul.f32 1.442695, %v1292_v13 }
 0x398   :  { %v1298_v41 = vsub.f32 0.0, %v1228_v58 }
 0x399   :  { %2621 = vpow2.f32 %v1302_v51 }
 0x39a   :  { %v1314_v32 = vmul.f32 1.442695, %v1298_v41  ;;  %v1208_v20 = vpop.f32.mrf.mxu0  ;;  %v2620_v22 = vpop.eup %2619 }
 0x39b   :  { %v1209_v57 = vadd.f32 %v1208_v20, %v3117_v35  ;;  %v1323_v45 = vadd.f32 1.0, %v2620_v22 }
 0x39c   :  { %2623 = vpow2.f32 %v1314_v32 }
 0x39d   :  { %v1297_v44 = vsub.f32 0.0, %v1209_v57  ;;  %v1230_v26 = vpop.f32.mrf.mxu1 }
 0x39e   :  { %v1231_v42 = vadd.f32 %v1230_v26, %v3087_v0  ;;  %v3402_v0 = vpop.f32.mrf.mxu3 }
 0x39f   :  { %v1312_v53 = vmul.f32 1.442695, %v1297_v44  ;;  %v2622_v9 = vpop.eup %2621 }
 0x3a0   :  { %v1322_v35 = vadd.f32 1.0, %v2622_v9 }
 0x3a1   :  { %2625 = vpow2.f32 %v1312_v53 }
 0x3a2   :  { %v2624_v61 = vpop.eup %2623  ;;  %v1244_v43 = vpop.f32.mrf.mxu2  ;;  %2627 = vrcp.f32 %v1323_v45 }
 0x3a3   :  { %v1211_v49 = vpop.f32.mrf.mxu0  ;;  %v1328_v4 = vadd.f32 1.0, %v2624_v61  ;;  %v1245_v47 = vadd.f32 %v1244_v43, %v3075_v60  ;;  %2629 = vtanh.f32 %v1231_v42 }
 0x3a4   :  { %v1212_v25 = vadd.f32 %v1211_v49, %v3127_v18 }
 0x3a5   :  { %v1294_v21 = vsub.f32 0.0, %v1245_v47  ;;  %v1232_v56 = vpop.f32.mrf.mxu1  ;;  %2631 = vrcp.f32 %v1328_v4 }
 0x3a6   :  { %v1233_v54 = vadd.f32 %v1232_v56, %v3093_v3 }
 0x3a7   :  { %v2626_v38 = vpop.eup %2625  ;;  %v1306_v33 = vmul.f32 1.442695, %v1294_v21 }
 0x3a8   :  { %v1327_v24 = vadd.f32 1.0, %v2626_v38  ;;  %2633 = vtanh.f32 %v1233_v54  ;;  %v2628_v55 = vpop.eup %2627 }
 0x3a9   :  { %2635 = vrcp.f32 %v1322_v35  ;;  %v2630_v18 = vpop.eup %2629 }
 0x3aa   :  { %2637 = vtanh.f32 %v1212_v25  ;;  %v1246_v30 = vpop.f32.mrf.mxu2  ;;  %v1353_v51 = vmul.f32 %v2630_v18, %v2628_v55 }
 0x3ab   :  { %v1213_v60 = vpop.f32.mrf.mxu0  ;;  %2639 = vpow2.f32 %v1306_v33  ;;  %v1247_v46 = vadd.f32 %v1246_v30, %v3083_v31  ;;  %v2632_v3 = vpop.eup %2631  ;;  %v3409_v31 = vld [vmem:[%s3695_s3 + $0x60] sm:$0xff] }
 0x3ac   :  { %v1214_v11 = vadd.f32 %v1213_v60, %v3138_v28  ;;  %2641 = vrcp.f32 %v1327_v24 }
 0x3ad   :  { %v1299_v13 = vsub.f32 0.0, %v1247_v46 }
 0x3ae   :  { %2643 = vtanh.f32 %v1214_v11  ;;  %v2634_v27 = vpop.eup %2633 }
 0x3af   :  { %v2636_v58 = vpop.eup %2635  ;;  %v1358_v41 = vmul.f32 %v2634_v27, %v2632_v3  ;;  %v1316_v32 = vmul.f32 1.442695, %v1299_v13 }
 0x3b0   :  { %v2638_v20 = vpop.eup %2637 }
 0x3b1   :  { %v2640_v57 = vpop.eup %2639  ;;  %2645 = vpow2.f32 %v1316_v32  ;;  %v1363_v44 = vpack.c.bf16 %v1358_v41, %v1353_v51  ;;  %v1352_v42 = vmul.f32 %v2638_v20, %v2636_v58 }
 0x3b2   :  { %v2642_v26 = vpop.eup %2641  ;;  %v1249_v22 = vpop.f32.mrf.mxu2  ;;  %v1324_v61 = vadd.f32 1.0, %v2640_v57 }
 0x3b3   :  { %v1263_v53 = vpop.f32.mrf.mxu3  ;;  %v1282_v45 = vpop.f32.mrf.mxu0  ;;  %1429 = vmatpush.bf16.msra.mxu2 %v1363_v44  ;;  %v1250_v4 = vadd.f32 %v1249_v22, %v3091_v2 }
 0x3b4   :  { %v2644_v28 = vpop.eup %2643  ;;  %v1264_v9 = vadd.f32 %v1263_v53, %v3089_v1  ;;  %v1283_v49 = vadd.f32 %v1282_v45, %v3261_v16  ;;  %2647 = vrcp.f32 %v1324_v61 }
 0x3b5   :  { %v1357_v43 = vmul.f32 %v2644_v28, %v2642_v26  ;;  %2649 = vtanh.f32 %v1250_v4  ;;  %v3722_v26 = vld [vmem:[#allocation22_spill] sm:$0xff]  ;;  %v3724_v4 = vld [vmem:[#allocation23_spill] sm:$0xff] }
 0x3b6   :  { %v1295_v47 = vsub.f32 0.0, %v1264_v9  ;;  %v1296_v35 = vsub.f32 0.0, %v1283_v49  ;;  %2385 = vmatmul.msk.bf16.vlgmr.msra.gmra.mxu2 %vm202_vm0, %v3409_v31 }
 0x3b7   :  { %v1362_v21 = vpack.c.bf16 %v1357_v43, %v1352_v42  ;;  %v2646_v56 = vpop.eup %2645 }
 0x3b8   :  { %v1308_v25 = vmul.f32 1.442695, %v1295_v47  ;;  %v1329_v54 = vadd.f32 1.0, %v2646_v56  ;;  %v1310_v1 = vmul.f32 1.442695, %v1296_v35 }
 0x3b9   :  { %1410 = vmatpush.bf16.msra.mxu1 %v1362_v21 }
 0x3ba   :  { %2651 = vpow2.f32 %v1308_v25  ;;  %v1251_v38 = vpop.f32.mrf.mxu2  ;;  %v2648_v55 = vpop.eup %2647 }
 0x3bb   :  { %v1265_v33 = vpop.f32.mrf.mxu3  ;;  %2653 = vpow2.f32 %v1310_v1  ;;  %v1252_v16 = vadd.f32 %v1251_v38, %v3101_v5  ;;  %v1284_v24 = vpop.f32.mrf.mxu0 }
 0x3bc   :  { %v1266_v2 = vadd.f32 %v1265_v33, %v3099_v34  ;;  %2383 = vmatmul.msk.bf16.vlgmr.msra.gmra.mxu1 %vm202_vm0, %v3409_v31  ;;  %2655 = vrcp.f32 %v1329_v54  ;;  %v1285_v30 = vadd.f32 %v1284_v24, %v3263_v37  ;;  %v2650_v11 = vpop.eup %2649  ;;  %v2487_v34 = vld [vmem:[%s3695_s3 + $0x68] sm:$0xff] }
 0x3bd   :  { %2657 = vtanh.f32 %v1252_v16  ;;  %v1354_v32 = vmul.f32 %v2650_v11, %v2648_v55 }
 0x3be   :  { %v1300_v60 = vsub.f32 0.0, %v1266_v2  ;;  %v1301_v46 = vsub.f32 0.0, %v1285_v30 }
 0x3c0   :  { %v1318_v18 = vmul.f32 1.442695, %v1300_v60  ;;  %v2652_v3 = vpop.eup %2651  ;;  %v1320_v13 = vmul.f32 1.442695, %v1301_v46 }
 0x3c1   :  { %v2654_v27 = vpop.eup %2653  ;;  %v1325_v41 = vadd.f32 1.0, %v2652_v3 }
 0x3c2   :  { %2659 = vpow2.f32 %v1318_v18  ;;  %v2656_v5 = vpop.eup %2655  ;;  %v1326_v20 = vadd.f32 1.0, %v2654_v27  ;;  %v1370_v18 = vpop.permute.xlu2 %1369 }
 0x3c3   :  { %v1268_v58 = vpop.f32.mrf.mxu3  ;;  %v2658_v51 = vpop.eup %2657  ;;  %2661 = vpow2.f32 %v1320_v13 }
 0x3c4   :  { %v1287_v37 = vpop.f32.mrf.mxu0  ;;  %v1359_v57 = vmul.f32 %v2658_v51, %v2656_v5  ;;  %v1269_v44 = vadd.f32 %v1268_v58, %v3107_v8  ;;  %2663 = vrcp.f32 %v1325_v41  ;;  %v3723_v8 = vld [vmem:[#allocation10_spill] sm:$0xff]  ;;  %v1375_v27 = vpop.permute.xlu0 %1374 }
 0x3c5   :  { %v1288_v22 = vadd.f32 %v1287_v37, %v3722_v26  ;;  %2665 = vrcp.f32 %v1326_v20 }
 0x3c6   :  { %2386 = vmatmul.msk.bf16.gmra.mxu2 %vm202_vm0, %v2487_v34  ;;  %v1364_v53 = vpack.c.bf16 %v1359_v57, %v1354_v32  ;;  %2667 = vtanh.f32 %v1269_v44  ;;  %v3443_v57 = vpop.permute.xlu1 %1729 }
 0x3c7   :  { %2669 = vtanh.f32 %v1288_v22 }
 0x3c8   :  { %v2660_v28 = vpop.eup %2659  ;;  %1448 = vmatpush.bf16.msrb.mxu3 %v1364_v53 }
 0x3c9   :  { %v1330_v9 = vadd.f32 1.0, %v2660_v28  ;;  %v2662_v45 = vpop.eup %2661 }
 0x3ca   :  { %v1331_v61 = vadd.f32 1.0, %v2662_v45  ;;  %v2664_v35 = vpop.eup %2663 }
 0x3cb   :  { %v1270_v42 = vpop.f32.mrf.mxu3  ;;  %2671 = vrcp.f32 %v1330_v9  ;;  %2387 = vmatmul.msk.bf16.vlgmr.msrb.gmra.mxu3 %vm202_vm0, %v3409_v31  ;;  %v2666_v21 = vpop.eup %2665 }
 0x3cc   :  { %v1271_v43 = vadd.f32 %v1270_v42, %v3723_v8  ;;  %v1289_v49 = vpop.f32.mrf.mxu0  ;;  %2384 = vmatmul.msk.bf16.gmra.mxu1 %vm202_vm0, %v2487_v34  ;;  %2673 = vrcp.f32 %v1331_v61  ;;  %v2668_v56 = vpop.eup %2667 }
 0x3cd   :  { %v1290_v47 = vadd.f32 %v1289_v49, %v3724_v4  ;;  %v2670_v25 = vpop.eup %2669  ;;  %v1355_v16 = vmul.f32 %v2668_v56, %v2664_v35 }
 0x3ce   :  { %2675 = vtanh.f32 %v1271_v43  ;;  %v1356_v24 = vmul.f32 %v2670_v25, %v2666_v21  ;;  %v2481_v21 = vld [vmem:[%s3695_s3 + $0x38] sm:$0xff] }
 0x3cf   :  { %2677 = vtanh.f32 %v1290_v47 }
 0x3d1   :  { %v2672_v54 = vpop.eup %2671 }
 0x3d2   :  { %v2674_v1 = vpop.eup %2673 }
 0x3d4   :  { %v2676_v38 = vpop.eup %2675 }
 0x3d5   :  { %v2678_v33 = vpop.eup %2677  ;;  %v1360_v2 = vmul.f32 %v2676_v38, %v2672_v54 }
 0x3d6   :  { %v1361_v30 = vmul.f32 %v2678_v33, %v2674_v1 }
 0x3d7   :  { %v1365_v60 = vpack.c.bf16 %v1360_v2, %v1355_v16 }
 0x3d8   :  { %v1366_v55 = vpack.c.bf16 %v1361_v30, %v1356_v24 }
 0x3d9   :  { %1467 = vmatpush.bf16.msra.mxu0 %v1365_v60 }
 0x3da   :  { %1486 = vmatpush.bf16.msrb.mxu1 %v1366_v55 }
 0x3db   :  { %2388 = vmatmul.msk.bf16.gmra.mxu3 %vm202_vm0, %v2487_v34 }
 0x3dc   :  { %2389 = vmatmul.msk.bf16.vlgmr.msra.gmra.mxu0 %vm202_vm0, %v3409_v31 }
 0x3dd   :  { %2391 = vmatmul.msk.bf16.vlgmr.msrb.gmra.mxu1 %vm202_vm0, %v3409_v31 }
 0x3ec   :  { %2390 = vmatmul.msk.bf16.gmra.mxu0 %vm202_vm0, %v2487_v34 }
 0x3ed   :  { %2392 = vmatmul.msk.bf16.gmra.mxu1 %vm202_vm0, %v2487_v34 }
 0x439   :  { %v1412_v46 = vpop.f32.mrf.mxu1  ;;  %v1431_v11 = vpop.f32.mrf.mxu2 }
 0x43a   :  { %v1413_v3 = vadd.f32 %v1412_v46, %v1370_v18  ;;  %v1432_v13 = vadd.f32 %v1431_v11, %v1370_v18 }
 0x43c   :  { %v1498_v58 = vadd.f32 %v1413_v3, %v3333_v12  ;;  %v1499_v37 = vadd.f32 %v1432_v13, %v3322_v14  ;;  %v2480_v12 = vld [vmem:[%s3695_s3 + $0x30] sm:$0xff] }
 0x43e   :  { %v1508_v34 = vmul.f32 0.70710677, %v1498_v58  ;;  %v1509_v26 = vmul.f32 0.70710677, %v1499_v37 }
 0x441   :  { %v1414_v5 = vpop.f32.mrf.mxu1  ;;  %v1433_v41 = vpop.f32.mrf.mxu2 }
 0x442   :  { %v1415_v51 = vadd.f32 %v1414_v5, %v1375_v27  ;;  %v1434_v32 = vadd.f32 %v1433_v41, %v1375_v27  ;;  %v3725_v41 = vld [vmem:[#allocation19_spill] sm:$0xff] }
 0x444   :  { %v1503_v31 = vadd.f32 %v1415_v51, %v3335_v50  ;;  %v1504_v20 = vadd.f32 %v1434_v32, %v3324_v52  ;;  %v3450_v52 = vpop.permute.xlu1 %1384  ;;  %v3452_v50 = vpop.permute.xlu0 %1379 }
 0x446   :  { %v1513_v44 = vmul.f32 0.70710677, %v1503_v31  ;;  %v1514_v22 = vmul.f32 0.70710677, %v1504_v20  ;;  %v3726_v31 = vld [vmem:[#allocation7_spill] sm:$0xff] }
 0x448   :  { %v1528_v53 = vpack.c.bf16 %v1513_v44, %v1508_v34  ;;  %v1529_v28 = vpack.c.bf16 %v1514_v22, %v1509_v26 }
 0x449   :  { %v1417_v9 = vpop.f32.mrf.mxu1 }
 0x44a   :  { %1556 = vmatpush.bf16.msrb.mxu2 %v1528_v53  ;;  %1575 = vmatpush.bf16.msra.mxu3 %v1529_v28  ;;  %v3455_v61 = vadd.f32 %v1417_v9, %v3452_v50 }
 0x44d   :  { %2401 = vmatmul.msk.bf16.vlgmr.msrb.gmra.mxu2 %vm202_vm0, %v2480_v12  ;;  %2403 = vmatmul.msk.bf16.vlgmr.msra.gmra.mxu3 %vm202_vm0, %v2480_v12 }
 0x44e   :  { %v1450_v14 = vpop.f32.mrf.mxu3 }
 0x44f   :  { %v1451_v8 = vadd.f32 %v1450_v14, %v1370_v18 }
 0x451   :  { %v1419_v45 = vpop.f32.mrf.mxu1  ;;  %v1500_v4 = vadd.f32 %v1451_v8, %v3345_v62  ;;  %v3728_v8 = vld [vmem:[#allocation9_spill] sm:$0xff] }
 0x452   :  { %v3458_v42 = vadd.f32 %v1419_v45, %v3450_v52 }
 0x453   :  { %v1510_v54 = vmul.f32 0.70710677, %v1500_v4 }
 0x454   :  { %v1860_v43 = vpack.c.bf16 %v3458_v42, %v3455_v61 }
 0x456   :  { %v1452_v49 = vpop.f32.mrf.mxu3 }
 0x457   :  { %v1453_v47 = vadd.f32 %v1452_v49, %v1375_v27 }
 0x459   :  { %v1469_v35 = vpop.f32.mrf.mxu0  ;;  %v1505_v56 = vadd.f32 %v1453_v47, %v3347_v15 }
 0x45a   :  { %v1488_v25 = vpop.f32.mrf.mxu1  ;;  %v1470_v33 = vadd.f32 %v1469_v35, %v1370_v18 }
 0x45b   :  { %v1515_v1 = vmul.f32 0.70710677, %v1505_v56  ;;  %v1489_v16 = vadd.f32 %v1488_v25, %v1370_v18 }
 0x45c   :  { %v1501_v2 = vadd.f32 %v1470_v33, %v3361_v59  ;;  %v3479_v59 = vpop.f32.mrf.mxu2  ;;  %v3729_v33 = vld [vmem:[#allocation8_spill] sm:$0xff] }
 0x45d   :  { %2402 = vmatmul.msk.bf16.gmra.mxu2 %vm202_vm0, %v2481_v21  ;;  %v1530_v38 = vpack.c.bf16 %v1515_v1, %v1510_v54  ;;  %2404 = vmatmul.msk.bf16.gmra.mxu3 %vm202_vm0, %v2481_v21  ;;  %v1502_v60 = vadd.f32 %v1489_v16, %v3369_v40 }
 0x45e   :  { %v1511_v11 = vmul.f32 0.70710677, %v1501_v2 }
 0x45f   :  { %1594 = vmatpush.bf16.msrb.mxu0 %v1530_v38  ;;  %v1512_v13 = vmul.f32 0.70710677, %v1502_v60  ;;  %v3730_v60 = vld [vmem:[#allocation5_spill] sm:$0xff] }
 0x461   :  { %v1471_v62 = vpop.f32.mrf.mxu0 }
 0x462   :  { %v1472_v24 = vadd.f32 %v1471_v62, %v1375_v27  ;;  %v1490_v30 = vpop.f32.mrf.mxu1  ;;  %2405 = vmatmul.msk.bf16.vlgmr.msrb.gmra.mxu0 %vm202_vm0, %v2480_v12 }
 0x463   :  { %v1491_v55 = vadd.f32 %v1490_v30, %v1375_v27 }
 0x464   :  { %v1506_v15 = vadd.f32 %v1472_v24, %v3363_v17  ;;  %v3481_v17 = vpop.f32.mrf.mxu3  ;;  %v3483_v40 = vpop.f32.mrf.mxu2 }
 0x465   :  { %v1507_v46 = vadd.f32 %v1491_v55, %v3371_v23 }
 0x466   :  { %v1516_v3 = vmul.f32 0.70710677, %v1506_v15  ;;  %v3731_v15 = vld [vmem:[#allocation12_spill] sm:$0xff] }
 0x467   :  { %v1517_v5 = vmul.f32 0.70710677, %v1507_v46 }
 0x468   :  { %v1531_v18 = vpack.c.bf16 %v1516_v3, %v1511_v11 }
 0x469   :  { %v1532_v58 = vpack.c.bf16 %v1517_v5, %v1512_v13  ;;  %v3487_v27 = vpop.f32.mrf.mxu0 }
 0x46a   :  { %1613 = vmatpush.bf16.msra.mxu1 %v1531_v18  ;;  %v3491_v53 = vpop.f32.mrf.mxu1 }
 0x46b   :  { %1632 = vmatpush.bf16.msra.mxu2 %v1532_v58 }
 0x46c   :  { %v3485_v23 = vpop.f32.mrf.mxu3 }
 0x46d   :  { %2407 = vmatmul.msk.bf16.vlgmr.msra.gmra.mxu1 %vm202_vm0, %v2480_v12 }
 0x46e   :  { %2409 = vmatmul.msk.bf16.vlgmr.msra.gmra.mxu2 %vm202_vm0, %v2480_v12  ;;  %v3727_v12 = vld [vmem:[#allocation21_spill] sm:$0xff] }
 0x471   :  { %v3493_v28 = vpop.f32.mrf.mxu0 }
 0x472   :  { %2406 = vmatmul.msk.bf16.gmra.mxu0 %vm202_vm0, %v2481_v21  ;;  %v3498_v2 = vpop.f32.mrf.mxu1 }
 0x47d   :  { %2408 = vmatmul.msk.bf16.gmra.mxu1 %vm202_vm0, %v2481_v21 }
 0x47e   :  { %2410 = vmatmul.msk.bf16.gmra.mxu2 %vm202_vm0, %v2481_v21 }
 0x4d0   :  { %v1558_v51 = vpop.f32.mrf.mxu2  ;;  %v1577_v32 = vpop.f32.mrf.mxu3 }
 0x4d1   :  { %v1559_v37 = vadd.f32 %v1558_v51, %v3725_v41  ;;  %v1578_v20 = vadd.f32 %v1577_v32, %v3726_v31  ;;  %v3732_v41 = vld [vmem:[#allocation11_spill] sm:$0xff]  ;;  %v3733_v32 = vld [vmem:[#allocation6_spill] sm:$0xff] }
 0x4d3   :  { %v1644_v34 = vsub.f32 0.0, %v1559_v37  ;;  %v1645_v44 = vsub.f32 0.0, %v1578_v20 }
 0x4d5   :  { %v1654_v26 = vmul.f32 1.442695, %v1644_v34  ;;  %v1656_v22 = vmul.f32 1.442695, %v1645_v44  ;;  %v3734_v34 = vld [vmem:[#allocation15_spill] sm:$0xff] }
 0x4d7   :  { %2679 = vpow2.f32 %v1654_v26 }
 0x4d8   :  { %v1560_v9 = vpop.f32.mrf.mxu2  ;;  %2681 = vpow2.f32 %v1656_v22  ;;  %v1579_v45 = vpop.f32.mrf.mxu3 }
 0x4d9   :  { %v1561_v14 = vadd.f32 %v1560_v9, %v3727_v12  ;;  %v1580_v49 = vadd.f32 %v1579_v45, %v3728_v8  ;;  %v3735_v12 = vld [vmem:[#allocation13_spill] sm:$0xff] }
 0x4db   :  { %v1649_v4 = vsub.f32 0.0, %v1561_v14  ;;  %v1650_v47 = vsub.f32 0.0, %v1580_v49 }
 0x4dd   :  { %v1664_v35 = vmul.f32 1.442695, %v1649_v4  ;;  %v2680_v21 = vpop.eup %2679  ;;  %v1666_v56 = vmul.f32 1.442695, %v1650_v47 }
 0x4de   :  { %v2682_v25 = vpop.eup %2681  ;;  %v1674_v38 = vadd.f32 1.0, %v2680_v21 }
 0x4df   :  { %2683 = vpow2.f32 %v1664_v35  ;;  %v1596_v54 = vpop.f32.mrf.mxu0  ;;  %v1675_v24 = vadd.f32 1.0, %v2682_v25 }
 0x4e0   :  { %v1563_v1 = vpop.f32.mrf.mxu2  ;;  %v1597_v16 = vadd.f32 %v1596_v54, %v3729_v33  ;;  %v1582_v62 = vpop.f32.mrf.mxu3  ;;  %2685 = vpow2.f32 %v1666_v56  ;;  %v3736_v33 = vld [vmem:[#allocation24_spill] sm:$0xff] }
 0x4e1   :  { %v1564_v55 = vadd.f32 %v1563_v1, %v3730_v60  ;;  %v1583_v46 = vadd.f32 %v1582_v62, %v3731_v15  ;;  %2687 = vrcp.f32 %v1674_v38  ;;  %v3737_v15 = vld [vmem:[#allocation16_spill] sm:$0xff] }
 0x4e2   :  { %v1646_v30 = vsub.f32 0.0, %v1597_v16  ;;  %2689 = vrcp.f32 %v1675_v24 }
 0x4e3   :  { %2691 = vtanh.f32 %v1564_v55 }
 0x4e4   :  { %v1658_v3 = vmul.f32 1.442695, %v1646_v30  ;;  %2693 = vtanh.f32 %v1583_v46 }
 0x4e5   :  { %v2684_v11 = vpop.eup %2683 }
 0x4e6   :  { %v1679_v13 = vadd.f32 1.0, %v2684_v11  ;;  %v2686_v5 = vpop.eup %2685  ;;  %2695 = vpow2.f32 %v1658_v3 }
 0x4e7   :  { %v1598_v18 = vpop.f32.mrf.mxu0  ;;  %v1680_v51 = vadd.f32 1.0, %v2686_v5  ;;  %v2688_v22 = vpop.eup %2687 }
 0x4e8   :  { %v1565_v58 = vpop.f32.mrf.mxu2  ;;  %v1599_v37 = vadd.f32 %v1598_v18, %v3732_v41  ;;  %v1584_v20 = vpop.f32.mrf.mxu3  ;;  %2697 = vrcp.f32 %v1679_v13  ;;  %v3738_v13 = vld [vmem:[#allocation14_spill] sm:$0xff] }
 0x4e9   :  { %v1566_v31 = vadd.f32 %v1565_v58, %v3733_v32  ;;  %v1585_v44 = vadd.f32 %v1584_v20, %v3734_v34  ;;  %2699 = vrcp.f32 %v1680_v51  ;;  %v2690_v45 = vpop.eup %2689  ;;  %v3512_v20 = vld [vmem:[%s3695_s3 + $0x70] sm:$0xff] }
 0x4ea   :  { %v1615_v26 = vpop.f32.mrf.mxu1  ;;  %v1651_v9 = vsub.f32 0.0, %v1599_v37  ;;  %v2692_v8 = vpop.eup %2691 }
 0x4eb   :  { %v1616_v14 = vadd.f32 %v1615_v26, %v3735_v12  ;;  %2701 = vtanh.f32 %v1566_v31  ;;  %v2694_v4 = vpop.eup %2693  ;;  %v1704_v60 = vmul.f32 %v2692_v8, %v2688_v22  ;;  %v3739_v26 = vld [vmem:[#allocation17_spill] sm:$0xff] }
 0x4ec   :  { %v1668_v49 = vmul.f32 1.442695, %v1651_v9  ;;  %2703 = vtanh.f32 %v1585_v44  ;;  %v2696_v35 = vpop.eup %2695  ;;  %v1705_v11 = vmul.f32 %v2694_v4, %v2690_v45  ;;  %v3740_v12 = vld [vmem:[#allocation25_spill] sm:$0xff] }
 0x4ed   :  { %v1647_v47 = vsub.f32 0.0, %v1616_v14  ;;  %v1676_v30 = vadd.f32 1.0, %v2696_v35 }
 0x4ee   :  { %2705 = vpow2.f32 %v1668_v49  ;;  %v2698_v21 = vpop.eup %2697 }
 0x4ef   :  { %v1601_v56 = vpop.f32.mrf.mxu0  ;;  %v2700_v25 = vpop.eup %2699  ;;  %v1660_v38 = vmul.f32 1.442695, %v1647_v47 }
 0x4f0   :  { %v1602_v5 = vadd.f32 %v1601_v56, %v3738_v13  ;;  %v3743_v13 = vld [vmem:[#allocation26_spill] sm:$0xff] }
 0x4f1   :  { %v1634_v54 = vpop.f32.mrf.mxu2  ;;  %v2702_v1 = vpop.eup %2701  ;;  %2707 = vpow2.f32 %v1660_v38 }
 0x4f2   :  { %v1635_v16 = vadd.f32 %v1634_v54, %v3736_v33  ;;  %v1617_v62 = vpop.f32.mrf.mxu1  ;;  %v2704_v24 = vpop.eup %2703  ;;  %v1709_v55 = vmul.f32 %v2702_v1, %v2698_v21  ;;  %2709 = vrcp.f32 %v1676_v30  ;;  %v3741_v54 = vld [vmem:[#allocation18_spill] sm:$0xff] }
 0x4f3   :  { %v1618_v46 = vadd.f32 %v1617_v62, %v3737_v15  ;;  %v1710_v3 = vmul.f32 %v2704_v24, %v2700_v25  ;;  %2711 = vtanh.f32 %v1602_v5 }
 0x4f4   :  { %v1648_v18 = vsub.f32 0.0, %v1635_v16  ;;  %v2706_v58 = vpop.eup %2705  ;;  %v1714_v41 = vpack.c.bf16 %v1709_v55, %v1704_v60  ;;  %v3742_v55 = vld [vmem:[#allocation20_spill] sm:$0xff] }
 0x4f5   :  { %v1652_v51 = vsub.f32 0.0, %v1618_v46  ;;  %v1681_v37 = vadd.f32 1.0, %v2706_v58  ;;  %v1715_v31 = vpack.c.bf16 %v1710_v3, %v1705_v11 }
 0x4f6   :  { %v1662_v32 = vmul.f32 1.442695, %v1648_v18  ;;  %1760 = vmatpush.bf16.msrb.mxu3 %v1714_v41  ;;  %v2489_v18 = vld [vmem:[%s3695_s3 + $0x78] sm:$0xff] }
 0x4f7   :  { %v1670_v34 = vmul.f32 1.442695, %v1652_v51  ;;  %v1603_v44 = vpop.f32.mrf.mxu0  ;;  %1777 = vmatpush.bf16.msra.mxu0 %v1715_v31  ;;  %2713 = vrcp.f32 %v1681_v37  ;;  %v2708_v8 = vpop.eup %2707 }
 0x4f8   :  { %v1604_v22 = vadd.f32 %v1603_v44, %v3739_v26  ;;  %2715 = vpow2.f32 %v1662_v32  ;;  %v2710_v4 = vpop.eup %2709  ;;  %v1677_v56 = vadd.f32 1.0, %v2708_v8  ;;  %v3744_v32 = vld [vmem:[#allocation27_spill] sm:$0xff] }
 0x4f9   :  { %v1636_v9 = vpop.f32.mrf.mxu2  ;;  %2419 = vmatmul.msk.bf16.vlgmr.msrb.gmra.mxu3 %vm202_vm0, %v3512_v20  ;;  %2717 = vpow2.f32 %v1670_v34  ;;  %v2712_v47 = vpop.eup %2711 }
 0x4fa   :  { %v1637_v14 = vadd.f32 %v1636_v9, %v3740_v12  ;;  %v1620_v45 = vpop.f32.mrf.mxu1  ;;  %2421 = vmatmul.msk.bf16.vlgmr.msra.gmra.mxu0 %vm202_vm0, %v3512_v20  ;;  %2719 = vtanh.f32 %v1604_v22  ;;  %v1706_v30 = vmul.f32 %v2712_v47, %v2710_v4 }
 0x4fb   :  { %v1621_v1 = vadd.f32 %v1620_v45, %v3741_v54 }
 0x4fc   :  { %v1653_v49 = vsub.f32 0.0, %v1637_v14 }
 0x4fd   :  { %v2714_v21 = vpop.eup %2713 }
 0x4fe   :  { %v1672_v35 = vmul.f32 1.442695, %v1653_v49  ;;  %v2716_v25 = vpop.eup %2715 }
 0x4ff   :  { %v2718_v38 = vpop.eup %2717  ;;  %v1678_v46 = vadd.f32 1.0, %v2716_v25 }
 0x500   :  { %2721 = vpow2.f32 %v1672_v35  ;;  %v2720_v16 = vpop.eup %2719  ;;  %v1682_v62 = vadd.f32 1.0, %v2718_v38 }
 0x501   :  { %v1639_v33 = vpop.f32.mrf.mxu2  ;;  %2723 = vrcp.f32 %v1677_v56  ;;  %v1711_v60 = vmul.f32 %v2720_v16, %v2714_v21 }
 0x502   :  { %v1622_v24 = vpop.f32.mrf.mxu1  ;;  %2725 = vtanh.f32 %v1621_v1  ;;  %v1640_v5 = vadd.f32 %v1639_v33, %v3743_v13  ;;  %v3538_v33 = vpop.permute.xlu2 %1734 }
 0x503   :  { %v1623_v15 = vadd.f32 %v1622_v24, %v3742_v55  ;;  %2727 = vrcp.f32 %v1682_v62  ;;  %v1716_v11 = vpack.c.bf16 %v1711_v60, %v1706_v30  ;;  %v1437_v55 = vadd.f32 %v3479_v59, %v3452_v50 }
 0x505   :  { %2729 = vtanh.f32 %v1623_v15  ;;  %1794 = vmatpush.bf16.msrb.mxu1 %v1716_v11 }
 0x506   :  { %v2722_v3 = vpop.eup %2721  ;;  %2731 = vrcp.f32 %v1678_v46  ;;  %v3546_v46 = vpop.permute.xlu0 %1032 }
 0x507   :  { %v1683_v58 = vadd.f32 1.0, %v2722_v3  ;;  %v2724_v51 = vpop.eup %2723  ;;  %2733 = vtanh.f32 %v1640_v5  ;;  %v1087_v13 = vadd.f32 %v3386_v6, %v3546_v46  ;;  %v1106_v42 = vadd.f32 %v3384_v36, %v3546_v46 }
 0x508   :  { %v2726_v37 = vpop.eup %2725  ;;  %2423 = vmatmul.msk.bf16.vlgmr.msrb.gmra.mxu1 %vm202_vm0, %v3512_v20 }
 0x509   :  { %v1641_v41 = vpop.f32.mrf.mxu2  ;;  %2420 = vmatmul.msk.bf16.gmra.mxu3 %vm202_vm0, %v2489_v18  ;;  %v2728_v34 = vpop.eup %2727  ;;  %2735 = vrcp.f32 %v1683_v58  ;;  %v1707_v26 = vmul.f32 %v2726_v37, %v2724_v51  ;;  %v1068_v37 = vadd.f32 %v3349_v10, %v3546_v46 }
 0x50a   :  { %v1642_v31 = vadd.f32 %v1641_v41, %v3744_v32  ;;  %2422 = vmatmul.msk.bf16.gmra.mxu0 %vm202_vm0, %v2489_v18  ;;  %v1028_v51 = vpop.permute.xlu2 %1027  ;;  %v3558_v32 = vld [vmem:[%s3696_s4] sm:$0xff] }
 0x50b   :  { %v2730_v44 = vpop.eup %2729  ;;  %v1085_v41 = vadd.f32 %v3382_v29, %v1028_v51 }
 0x50c   :  { %2737 = vtanh.f32 %v1642_v31  ;;  %v1712_v22 = vmul.f32 %v2730_v44, %v2728_v34  ;;  %v2732_v9 = vpop.eup %2731  ;;  %v1066_v31 = vadd.f32 %v3340_v63, %v1028_v51  ;;  %v1456_v63 = vadd.f32 %v3481_v17, %v3452_v50 }
 0x50d   :  { %v2734_v14 = vpop.eup %2733  ;;  %v1856_v59 = vpack.c.bf16 %v1087_v13, %v1085_v41 }
 0x50e   :  { %v1717_v12 = vpack.c.bf16 %v1712_v22, %v1707_v26  ;;  %v1708_v49 = vmul.f32 %v2734_v14, %v2732_v9  ;;  %v1855_v44 = vpack.c.bf16 %v1068_v37, %v1066_v31  ;;  %v1458_v22 = vadd.f32 %v3485_v23, %v3450_v52  ;;  %v2491_v23 = vld [vmem:[%s3696_s4 + $0x8] sm:$0xff] }
 0x50f   :  { %v2736_v45 = vpop.eup %2735  ;;  %v1104_v14 = vadd.f32 %v3380_v19, %v1028_v51  ;;  %v1477_v19 = vadd.f32 %v3493_v28, %v3450_v52  ;;  %v1496_v28 = vadd.f32 %v3498_v2, %v3450_v52 }
 0x510   :  { %1811 = vmatpush.bf16.msrb.mxu2 %v1717_v12 }
 0x512   :  { %v2738_v8 = vpop.eup %2737 }
 0x513   :  { %v1713_v4 = vmul.f32 %v2738_v8, %v2736_v45  ;;  %2425 = vmatmul.msk.bf16.vlgmr.msrb.gmra.mxu2 %vm202_vm0, %v3512_v20  ;;  %v1857_v45 = vpack.c.bf16 %v1106_v42, %v1104_v14 }
 0x515   :  { %v1718_v47 = vpack.c.bf16 %v1713_v4, %v1708_v49 }
 0x517   :  { %1828 = vmatpush.bf16.msra.mxu3 %v1718_v47  ;;  %v1475_v47 = vadd.f32 %v3487_v27, %v3452_v50 }
 0x518   :  { %2424 = vmatmul.msk.bf16.gmra.mxu1 %vm202_vm0, %v2489_v18 }
 0x51a   :  { %2427 = vmatmul.msk.bf16.vlgmr.msra.gmra.mxu3 %vm202_vm0, %v3512_v20  ;;  %v1439_v20 = vadd.f32 %v3483_v40, %v3450_v52 }
 0x51c   :  { %v1861_v5 = vpack.c.bf16 %v1439_v20, %v1437_v55  ;;  %v3621_v55 = vpop.permute.xlu1 %1892 }
 0x523   :  { %2426 = vmatmul.msk.bf16.gmra.mxu2 %vm202_vm0, %v2489_v18 }
 0x52a   :  { %2428 = vmatmul.msk.bf16.gmra.mxu3 %vm202_vm0, %v2489_v18 }
 0x577   :  { %v1779_v35 = vpop.f32.mrf.mxu0 }
 0x57c   :  { %v1762_v21 = vpop.f32.mrf.mxu3 }
 0x57d   :  { %v1125_v21 = vadd.f32 %v3393_v48, %v3546_v46  ;;  %v1144_v48 = vadd.f32 %v3402_v0, %v3546_v46  ;;  %v3623_v46 = vpop.permute.xlu0 %1882 }
 0x57f   :  { %v1780_v56 = vpop.f32.mrf.mxu0 }
 0x580   :  { %v1863_v56 = vpack.c.bf16 %v1477_v19, %v1475_v47 }
 0x584   :  { %v1763_v25 = vpop.f32.mrf.mxu3 }
 0x585   :  { %v1796_v54 = vpop.f32.mrf.mxu1 }
 0x587   :  { %v1782_v1 = vpop.f32.mrf.mxu0 }
 0x588   :  { %v1783_v24 = vadd.f32 %v1782_v1, %v3443_v57  ;;  %v1123_v1 = vadd.f32 %v3389_v39, %v1028_v51  ;;  %v1142_v39 = vadd.f32 %v3396_v7, %v1028_v51 }
 0x58a   :  { %v1858_v27 = vpack.c.bf16 %v1125_v21, %v1123_v1  ;;  %v1859_v52 = vpack.c.bf16 %v1144_v48, %v1142_v39 }
 0x58c   :  { %v1765_v38 = vpop.f32.mrf.mxu3 }
 0x58d   :  { %v1797_v16 = vpop.f32.mrf.mxu1  ;;  %v1766_v11 = vadd.f32 %v1765_v38, %v3443_v57 }
 0x58e   :  { %v1494_v16 = vadd.f32 %v3491_v53, %v3452_v50 }
 0x58f   :  { %v1784_v62 = vpop.f32.mrf.mxu0 }
 0x590   :  { %v1785_v30 = vadd.f32 %v1784_v62, %v3538_v33  ;;  %v1864_v62 = vpack.c.bf16 %v1496_v28, %v1494_v16  ;;  %v3654_v28 = vld [vmem:[%s3696_s4 + $0x18] sm:$0x3] }
 0x592   :  { %v1866_v60 = vpack.c.bf16 %v1785_v30, %v1783_v24 }
 0x594   :  { %1954 = vmatpush.bf16.msra.mxu1 %v1866_v60  ;;  %v1767_v15 = vpop.f32.mrf.mxu3 }
 0x595   :  { %v1768_v3 = vadd.f32 %v1767_v15, %v3538_v33  ;;  %v1799_v18 = vpop.f32.mrf.mxu1 }
 0x596   :  { %v1813_v58 = vpop.f32.mrf.mxu2  ;;  %v1800_v26 = vadd.f32 %v1799_v18, %v3443_v57 }
 0x597   :  { %v1865_v40 = vpack.c.bf16 %v1768_v3, %v1766_v11  ;;  %v3625_v11 = vpop.permute.xlu2 %1897  ;;  %v3630_v58 = vpop.permute.xlu1 %1887 }
 0x598   :  { %1955 = vmatpush.bf16.msra.mxu1 %v1861_v5 }
 0x599   :  { %1930 = vmatpush.bf16.msrb.mxu0 %v1865_v40 }
 0x59c   :  { %1956 = vmatpush.bf16.msra.mxu1 %v1856_v59 }
 0x59d   :  { %v1830_v6 = vpop.f32.mrf.mxu3  ;;  %1931 = vmatpush.bf16.msrb.mxu0 %v1860_v43  ;;  %v1801_v29 = vpop.f32.mrf.mxu1  ;;  %v1862_v43 = vpack.c.bf16 %v1458_v22, %v1456_v63 }
 0x59e   :  { %v1814_v34 = vpop.f32.mrf.mxu2  ;;  %v1802_v10 = vadd.f32 %v1801_v29, %v3538_v33  ;;  %v3635_v6 = vpop.permute.xlu0 %1877 }
 0x59f   :  { %2444 = vmatmul.msk.bf16.vlgmr.msra.gmra.mxu1 %vm1915_vm1, %v3558_v32  ;;  %v3639_v22 = vpop.permute.xlu2 %1872 }
 0x5a0   :  { %v1867_v9 = vpack.c.bf16 %v1802_v10, %v1800_v26 }
 0x5a1   :  { %1932 = vmatpush.bf16.msrb.mxu0 %v1855_v44 }
 0x5a2   :  { %1978 = vmatpush.bf16.msra.mxu2 %v1867_v9 }
 0x5a4   :  { %2441 = vmatmul.msk.bf16.vlgmr.msrb.gmra.mxu0 %vm1915_vm1, %v3558_v32 }
 0x5a5   :  { %v1831_v61 = vpop.f32.mrf.mxu3 }
 0x5a6   :  { %v1816_v12 = vpop.f32.mrf.mxu2  ;;  %1979 = vmatpush.bf16.msra.mxu2 %v1862_v43 }
 0x5a7   :  { %v1817_v49 = vadd.f32 %v1816_v12, %v3443_v57 }
 0x5aa   :  { %1980 = vmatpush.bf16.msra.mxu2 %v1857_v45 }
 0x5ad   :  { %v1833_v17 = vpop.f32.mrf.mxu3  ;;  %2447 = vmatmul.msk.bf16.vlgmr.msra.gmra.mxu2 %vm1915_vm1, %v3558_v32 }
 0x5ae   :  { %v1818_v8 = vpop.f32.mrf.mxu2  ;;  %v1834_v25 = vadd.f32 %v1833_v17, %v3443_v57  ;;  %v2492_v57 = vld [vmem:[%s3696_s4 + $0x10] sm:$0xff]  ;;  %s2766_s4 = smov [#allocation2]  }
 0x5af   :  { %v1819_v36 = vadd.f32 %v1818_v8, %v3538_v33  ;;  %2445 = vmatmul.msk.bf16.gmra.mxu1 %vm1915_vm1, %v2491_v23  ;;  %s2182_s2 = sshll.u32 %s2766_s4, 4  ;;  %s2183_s2 = int_to_ptr.vmem [resolvable:$true] %s2182_s2 }
 0x5b1   :  { %v1868_v4 = vpack.c.bf16 %v1819_v36, %v1817_v49 }
 0x5b3   :  { %2002 = vmatpush.bf16.msrb.mxu3 %v1868_v4 }
 0x5b4   :  { %2442 = vmatmul.msk.bf16.gmra.mxu0 %vm1915_vm1, %v2491_v23 }
 0x5b5   :  { %v1835_v35 = vpop.f32.mrf.mxu3 }
 0x5b6   :  { %v1836_v54 = vadd.f32 %v1835_v35, %v3538_v33 }
 0x5b7   :  { %2003 = vmatpush.bf16.msrb.mxu3 %v1863_v56 }
 0x5b8   :  { %v1869_v38 = vpack.c.bf16 %v1836_v54, %v1834_v25 }
 0x5ba   :  { %2026 = vmatpush.bf16.msra.mxu0 %v1869_v38 }
 0x5bb   :  { %2004 = vmatpush.bf16.msrb.mxu3 %v1858_v27 }
 0x5bd   :  { %2448 = vmatmul.msk.bf16.gmra.mxu2 %vm1915_vm1, %v2491_v23 }
 0x5be   :  { %2027 = vmatpush.bf16.msra.mxu0 %v1864_v62  ;;  %2450 = vmatmul.msk.bf16.vlgmr.msrb.gmra.mxu3 %vm1915_vm1, %v3558_v32 }
 0x5bf   :  { %2446 = vmatmul.msk.bf16.gmra.mxu1 %vm1915_vm1, %v2492_v57 }
 0x5c2   :  { %2028 = vmatpush.bf16.msra.mxu0 %v1859_v52 }
 0x5c4   :  { %2443 = vmatmul.msk.bf16.gmra.mxu0 %vm1915_vm1, %v2492_v57 }
 0x5cd   :  { %2449 = vmatmul.msk.bf16.gmra.mxu2 %vm1915_vm1, %v2492_v57 }
 0x5ce   :  { %2451 = vmatmul.msk.bf16.gmra.mxu3 %vm1915_vm1, %v2491_v23 }
 0x5d4   :  { %2453 = vmatmul.msk.bf16.vlgmr.msra.gmra.mxu0 %vm1915_vm1, %v3558_v32 }
 0x5de   :  { %2452 = vmatmul.msk.bf16.gmra.mxu3 %vm1915_vm1, %v2492_v57 }
 0x5e4   :  { %2454 = vmatmul.msk.bf16.gmra.mxu0 %vm1915_vm1, %v2491_v23 }
 0x5f4   :  { %2455 = vmatmul.msk.bf16.gmra.mxu0 %vm1915_vm1, %v2492_v57 }
 0x61c   :  { %v1958_v7 = vpop.f32.mrf.mxu1 }
 0x61d   :  { %v1959_v42 = vadd.f32 %v1958_v7, %v3639_v22 }
 0x61f   :  { %v2046_v19 = vmax.f32 %v1959_v42, 0.0 }
 0x621   :  { %v1934_v0 = vpop.f32.mrf.mxu0 }
 0x622   :  { %v1935_v4 = vadd.f32 %v1934_v0, %v3639_v22 }
 0x624   :  { %v1960_v50 = vpop.f32.mrf.mxu1  ;;  %v2045_v38 = vmax.f32 %v1935_v4, 0.0 }
 0x625   :  { %v1961_v29 = vadd.f32 %v1960_v50, %v3635_v6 }
 0x627   :  { %v2051_v23 = vmax.f32 %v1961_v29, 0.0 }
 0x629   :  { %v1936_v53 = vpop.f32.mrf.mxu0  ;;  %v2076_v35 = vpack.c.bf16 %v2051_v23, %v2046_v19 }
 0x62a   :  { %v1937_v8 = vadd.f32 %v1936_v53, %v3635_v6 }
 0x62c   :  { %v1963_v2 = vpop.f32.mrf.mxu1  ;;  %v2050_v25 = vmax.f32 %v1937_v8, 0.0 }
 0x62d   :  { %v1964_v59 = vadd.f32 %v1963_v2, %v3623_v46 }
 0x62e   :  { %v2075_v27 = vpack.c.bf16 %v2050_v25, %v2045_v38  ;;  %v2093_v25 = vpop.permute.xlu1 %2092 }
 0x62f   :  { %v2056_v43 = vmax.f32 %v1964_v59, 0.0 }
 0x630   :  { %v3617_v33 = vpop.f32.mrf.mxu2 }
 0x631   :  { %v1939_v24 = vpop.f32.mrf.mxu0 }
 0x632   :  { %v1940_v12 = vadd.f32 %v1939_v24, %v3623_v46 }
 0x634   :  { %v1965_v30 = vpop.f32.mrf.mxu1  ;;  %v2055_v47 = vmax.f32 %v1940_v12, 0.0 }
 0x635   :  { %v1966_v40 = vadd.f32 %v1965_v30, %v3630_v58  ;;  %v1983_v30 = vadd.f32 %v3617_v33, %v3639_v22 }
 0x637   :  { %v2061_v34 = vmax.f32 %v1966_v40, 0.0  ;;  %v2047_v40 = vmax.f32 %v1983_v30, 0.0 }
 0x638   :  { %v3619_v20 = vpop.f32.mrf.mxu2 }
 0x639   :  { %v1941_v60 = vpop.f32.mrf.mxu0  ;;  %v2081_v17 = vpack.c.bf16 %v2061_v34, %v2056_v43  ;;  %v1985_v53 = vadd.f32 %v3619_v20, %v3635_v6 }
 0x63a   :  { %v1942_v9 = vadd.f32 %v1941_v60, %v3630_v58 }
 0x63c   :  { %v1968_v15 = vpop.f32.mrf.mxu1  ;;  %v2060_v49 = vmax.f32 %v1942_v9, 0.0 }
 0x63d   :  { %v1969_v18 = vadd.f32 %v1968_v15, %v3621_v55 }
 0x63e   :  { %v2080_v54 = vpack.c.bf16 %v2060_v49, %v2055_v47 }
 0x63f   :  { %v2066_v37 = vmax.f32 %v1969_v18, 0.0 }
 0x640   :  { %v1987_v3 = vpop.f32.mrf.mxu2 }
 0x641   :  { %v1944_v13 = vpop.f32.mrf.mxu0  ;;  %v3627_v5 = vpop.f32.mrf.mxu3  ;;  %v1988_v7 = vadd.f32 %v1987_v3, %v3623_v46 }
 0x642   :  { %v1945_v31 = vadd.f32 %v1944_v13, %v3621_v55  ;;  %v2052_v13 = vmax.f32 %v1985_v53, 0.0 }
 0x643   :  { %v2057_v60 = vmax.f32 %v1988_v7, 0.0 }
 0x644   :  { %v1970_v51 = vpop.f32.mrf.mxu1  ;;  %v2065_v14 = vmax.f32 %v1945_v31, 0.0 }
 0x645   :  { %v1971_v41 = vadd.f32 %v1970_v51, %v3625_v11 }
 0x647   :  { %v2071_v32 = vmax.f32 %v1971_v41, 0.0  ;;  %v2077_v41 = vpack.c.bf16 %v2052_v13, %v2047_v40 }
 0x648   :  { %v1989_v26 = vpop.f32.mrf.mxu2 }
 0x649   :  { %v2086_v44 = vpack.c.bf16 %v2071_v32, %v2066_v37  ;;  %v1946_v10 = vpop.f32.mrf.mxu0  ;;  %v3643_v61 = vpop.f32.mrf.mxu3  ;;  %v1990_v57 = vadd.f32 %v1989_v26, %v3630_v58 }
 0x64a   :  { %v1947_v63 = vadd.f32 %v1946_v10, %v3625_v11  ;;  %v2009_v34 = vadd.f32 %v3643_v61, %v3635_v6  ;;  %v2007_v10 = vadd.f32 %v3627_v5, %v3639_v22 }
 0x64b   :  { %2116 = vmatpush.bf16.msrb.mxu2 %v2086_v44  ;;  %v2062_v2 = vmax.f32 %v1990_v57, 0.0 }
 0x64c   :  { %v2070_v45 = vmax.f32 %v1947_v63, 0.0  ;;  %v2053_v42 = vmax.f32 %v2009_v34, 0.0  ;;  %v2048_v12 = vmax.f32 %v2007_v10, 0.0 }
 0x64d   :  { %v2082_v18 = vpack.c.bf16 %v2062_v2, %v2057_v60 }
 0x64e   :  { %v2085_v36 = vpack.c.bf16 %v2070_v45, %v2065_v14  ;;  %v2078_v14 = vpack.c.bf16 %v2053_v42, %v2048_v12 }
 0x64f   :  { %2117 = vmatpush.bf16.msrb.mxu2 %v2081_v17 }
 0x650   :  { %2103 = vmatpush.bf16.msrb.mxu1 %v2085_v36  ;;  %v1992_v21 = vpop.f32.mrf.mxu2 }
 0x651   :  { %v3649_v56 = vpop.f32.mrf.mxu0  ;;  %v2011_v1 = vpop.f32.mrf.mxu3  ;;  %v1993_v16 = vadd.f32 %v1992_v21, %v3621_v55 }
 0x652   :  { %v2012_v33 = vadd.f32 %v2011_v1, %v3623_v46 }
 0x653   :  { %2118 = vmatpush.bf16.msrb.mxu2 %v2076_v35  ;;  %v2067_v0 = vmax.f32 %v1993_v16, 0.0 }
 0x654   :  { %2104 = vmatpush.bf16.msrb.mxu1 %v2080_v54  ;;  %v2058_v9 = vmax.f32 %v2012_v33, 0.0 }
 0x656   :  { %2457 = vmatmul.msk.bf16.vlgmr.msrb.gmra.mxu2 %vm1915_vm1, %v3654_v28 }
 0x658   :  { %2105 = vmatpush.bf16.msrb.mxu1 %v2075_v27  ;;  %v1994_v48 = vpop.f32.mrf.mxu2 }
 0x659   :  { %v2032_v62 = vpop.f32.mrf.mxu0  ;;  %v1995_v39 = vadd.f32 %v1994_v48, %v3625_v11  ;;  %v2013_v52 = vpop.f32.mrf.mxu3 }
 0x65a   :  { %v2014_v20 = vadd.f32 %v2013_v52, %v3630_v58  ;;  %v2033_v36 = vadd.f32 %v2032_v62, %v3635_v6 }
 0x65b   :  { %2456 = vmatmul.msk.bf16.vlgmr.msrb.gmra.mxu1 %vm1915_vm1, %v3654_v28  ;;  %v2072_v50 = vmax.f32 %v1995_v39, 0.0 }
 0x65c   :  { %v2063_v44 = vmax.f32 %v2014_v20, 0.0  ;;  %v2054_v35 = vmax.f32 %v2033_v36, 0.0 }
 0x65d   :  { %v2087_v24 = vpack.c.bf16 %v2072_v50, %v2067_v0 }
 0x65e   :  { %v2083_v43 = vpack.c.bf16 %v2063_v44, %v2058_v9 }
 0x65f   :  { %2129 = vmatpush.bf16.msra.mxu3 %v2087_v24 }
 0x661   :  { %v2035_v15 = vpop.f32.mrf.mxu0  ;;  %v2016_v51 = vpop.f32.mrf.mxu3 }
 0x662   :  { %v2017_v3 = vadd.f32 %v2016_v51, %v3621_v55  ;;  %v2036_v8 = vadd.f32 %v2035_v15, %v3623_v46 }
 0x663   :  { %2130 = vmatpush.bf16.msra.mxu3 %v2082_v18 }
 0x664   :  { %v2068_v31 = vmax.f32 %v2017_v3, 0.0  ;;  %v2059_v47 = vmax.f32 %v2036_v8, 0.0 }
 0x667   :  { %2131 = vmatpush.bf16.msra.mxu3 %v2077_v41 }
 0x669   :  { %v2037_v59 = vpop.f32.mrf.mxu0  ;;  %v2018_v37 = vpop.f32.mrf.mxu3 }
 0x66a   :  { %v2019_v32 = vadd.f32 %v2018_v37, %v3625_v11  ;;  %2458 = vmatmul.msk.bf16.vlgmr.msra.gmra.mxu3 %vm1915_vm1, %v3654_v28  ;;  %v2038_v17 = vadd.f32 %v2037_v59, %v3630_v58 }
 0x66c   :  { %v2073_v29 = vmax.f32 %v2019_v32, 0.0  ;;  %v2064_v19 = vmax.f32 %v2038_v17, 0.0 }
 0x66e   :  { %v2088_v26 = vpack.c.bf16 %v2073_v29, %v2068_v31  ;;  %v2084_v58 = vpack.c.bf16 %v2064_v19, %v2059_v47 }
 0x670   :  { %2142 = vmatpush.bf16.msra.mxu1 %v2088_v26 }
 0x671   :  { %v2040_v63 = vpop.f32.mrf.mxu0 }
 0x672   :  { %v2041_v45 = vadd.f32 %v2040_v63, %v3621_v55  ;;  %v2031_v55 = vadd.f32 %v3649_v56, %v3639_v22 }
 0x674   :  { %2143 = vmatpush.bf16.msra.mxu1 %v2083_v43  ;;  %v2069_v49 = vmax.f32 %v2041_v45, 0.0  ;;  %v2049_v21 = vmax.f32 %v2031_v55, 0.0 }
 0x678   :  { %2144 = vmatpush.bf16.msra.mxu1 %v2078_v14 }
 0x679   :  { %v2042_v23 = vpop.f32.mrf.mxu0 }
 0x67a   :  { %v2043_v61 = vadd.f32 %v2042_v23, %v3625_v11  ;;  %v2079_v11 = vpack.c.bf16 %v2054_v35, %v2049_v21 }
 0x67b   :  { %2459 = vmatmul.msk.bf16.vlgmr.msra.gmra.mxu1 %vm1915_vm1, %v3654_v28 }
 0x67c   :  { %v2074_v5 = vmax.f32 %v2043_v61, 0.0 }
 0x67e   :  { %v2089_v4 = vpack.c.bf16 %v2074_v5, %v2069_v49 }
 0x680   :  { %2155 = vmatpush.bf16.msra.mxu2 %v2089_v4 }
 0x684   :  { %2156 = vmatpush.bf16.msra.mxu2 %v2084_v58 }
 0x688   :  { %2157 = vmatpush.bf16.msra.mxu2 %v2079_v11 }
 0x68b   :  { %2460 = vmatmul.msk.bf16.vlgmr.msra.gmra.mxu2 %vm1915_vm1, %v3654_v28 }
 0x6d8   :  { %v2107_v46 = vpop.f32.mrf.mxu1 }
 0x6d9   :  { %v2120_v54 = vpop.f32.mrf.mxu2  ;;  %v2108_v1 = vadd.f32 %v2107_v46, %v2093_v25 }
 0x6da   :  { %v2121_v6 = vadd.f32 %v2120_v54, %v2093_v25 }
 0x6dc   :  { %v2167_v38 = vrot.slane %v2121_v6, 4 }
 0x6de   :  { %v2170_v27 = vsel %vm2169_vm2, %v2108_v1, %v2167_v38 }
 0x6df   :  { %2174 = vst [vmem:[#allocation2] sm:$0x77] %v2170_v27 }
 0x6e0   :  { %v2109_v22 = vpop.f32.mrf.mxu1 }
 0x6e1   :  { %v2122_v56 = vpop.f32.mrf.mxu2 }
 0x6ed   :  { %v2133_v16 = vpop.f32.mrf.mxu3 }
 0x6ee   :  { %v2134_v39 = vadd.f32 %v2133_v16, %v2093_v25 }
 0x6f5   :  { %v2135_v48 = vpop.f32.mrf.mxu3 }
 0x6f8   :  { %v2146_v62 = vpop.f32.mrf.mxu1 }
 0x6f9   :  { %v2147_v57 = vadd.f32 %v2146_v62, %v2093_v25 }
 0x6fb   :  { %v2168_v52 = vrot.slane %v2147_v57, 4 }
 0x6fd   :  { %v2171_v7 = vsel %vm2169_vm2, %v2134_v39, %v2168_v52 }
 0x6fe   :  { %2175 = vst [vmem:[#allocation2 + $0x8] sm:$0x77] %v2171_v7 }
 0x700   :  { %v2148_v28 = vpop.f32.mrf.mxu1 }
 0x70e   :  { %v2159_v0 = vpop.f32.mrf.mxu2 }
 0x70f   :  { %v2160_v50 = vadd.f32 %v2159_v0, %v2093_v25 }
 0x711   :  { %2176 = vst [vmem:[#allocation2 + $0x10] sm:$0x7] %v2160_v50 }
 0x712   :  { %2187 = dma.vmem_to_hbm [thread:$0]  %s2183_s2, 320, %s2185_s17, [#allocation3]  }
 0x716   :  { %v2161_v53 = vpop.f32.mrf.mxu2 }
 0x717   :  { %2763 = dma.done.wait [#allocation3], 320  }
 0x718   :  { %2764 = vsyncadd [#allocation3], 4294966976 }
 0x719   :  { %2192 = vsyncpa [#allocation3], 1 }

</bundles_post_ra>
